<compile_context>
chip_gen: v7x
topology: tpu7x:2x2x1
jax: 0.10.0
libtpu: 0.0.40
codegen_flags: <defaults>
</compile_context>

<pallas_src>
import functools

import jax
import jax.numpy as jnp
from jax.experimental import pallas as pl
from jax.experimental.pallas import tpu as pltpu


# ----------------------------- kernel helpers ------------------------------

def _layernorm(x, g, b, eps):
    mu = jnp.mean(x, axis=-1, keepdims=True)
    var = jnp.mean((x - mu) ** 2, axis=-1, keepdims=True)
    return (x - mu) * jax.lax.rsqrt(var + eps) * g + b


# ------------------- fused kernel: embed + all blocks -----------------------

def fused_encoder_kernel(xin_ref, np_ref, kp_ref,
                         wemb_ref, ngb_ref,
                         wq_ref, wk_ref, wv_ref, fcw_ref,
                         w1_ref, w2_ref, vecs_ref,
                         out_ref, attn_ref,
                         bias_scr,
                         *, num_heads, d_k, d_v, batch_tile, seq_len):
    j = pl.program_id(1)                       # layer index (inner, "arbitrary")
    H, dk, dv, Bt, S = num_heads, d_k, d_v, batch_tile, seq_len
    M = Bt * S                                 # batch-folded rows fed to the MXU
    D = out_ref.shape[1]
    Dh = w1_ref.shape[2]
    G = H * Bt                                 # attention batch dim (head-major)

    non_pad = np_ref[...]                      # (M, 1) f32, 1.0 => valid token

    # ---- layer 0 only: fused (obj|pos) embedding + top-level LN (eps=1e-6),
    #      and the additive attention bias (key-pad OR causal), hoisted out of
    #      the layer loop.
    @pl.when(j == 0)
    def _():
        emb = jnp.dot(xin_ref[...].astype(jnp.bfloat16), wemb_ref[...],
                      preferred_element_type=jnp.float32)            # (M, D)
        out_ref[...] = _layernorm(emb, ngb_ref[0:1, :], ngb_ref[1:2, :], 1e-6)

        row = jax.lax.broadcasted_iota(jnp.int32, (S, S), 0)
        col = jax.lax.broadcasted_iota(jnp.int32, (S, S), 1)
        causal = (col > row)[None, :, :]                              # (1, S, S)
        kpad = (kp_ref[...] > 0.0)[:, None, :]                        # (Bt, 1, S)
        bias_scr[...] = jnp.where(jnp.logical_or(causal, kpad), -1e30, 0.0)

    x = out_ref[...]                           # (M, D) f32 residual stream
    x_bf = x.astype(jnp.bfloat16)

    vec = vecs_ref[0]                          # (8, Dmax) packed per-layer vectors
    fcb, ln1g, ln1b = vec[0:1, :D], vec[1:2, :D], vec[2:3, :D]
    b1 = vec[3:4, :Dh]
    b2, ln2g, ln2b = vec[4:5, :D], vec[5:6, :D], vec[6:7, :D]

    # ---- multi-head self-attention (heads as einsum batch dim, no slicing) --
    x_h = jnp.broadcast_to(x_bf[None], (H, M, D))
    q = jnp.einsum('hmd,hdk->hmk', x_h, wq_ref[0],
                   preferred_element_type=jnp.float32)                # (H, M, dk)
    k = jnp.einsum('hmd,hdk->hmk', x_h, wk_ref[0],
                   preferred_element_type=jnp.float32)
    v = jnp.einsum('hmd,hdk->hmk', x_h, wv_ref[0],
                   preferred_element_type=jnp.float32)                # (H, M, dv)

    # (H, Bt*S, d) -> (H*Bt, S, d): single batch dim for the attention einsums
    qg = q.reshape(G, S, dk).astype(jnp.bfloat16)
    kg = k.reshape(G, S, dk).astype(jnp.bfloat16)
    vg = v.reshape(G, S, dv).astype(jnp.bfloat16)

    scale = 1.0 / (dk ** 0.5)
    scores = jnp.einsum('gqd,gkd->gqk', qg, kg,
                        preferred_element_type=jnp.float32) * scale   # (G, S, S)
    bias_g = jnp.broadcast_to(bias_scr[...][None], (H, Bt, S, S)).reshape(G, S, S)
    scores = scores + bias_g

    m = jnp.max(scores, axis=-1, keepdims=True)
    e = jnp.exp(scores - m)
    denom = jnp.sum(e, axis=-1, keepdims=True)
    p = e * pl.reciprocal(denom, approx=True)                         # (G, S, S) f32
    attn_ref[...] = p.reshape(H, Bt, S, S).astype(jnp.bfloat16)       # bf16 writeback

    ctx = jnp.einsum('gqk,gkd->gqd', p.astype(jnp.bfloat16), vg,
                     preferred_element_type=jnp.float32)              # (G, S, dv)
    # merge heads back into lanes and do ONE output-projection matmul
    ctx_m = jnp.concatenate(
        [ctx[h * Bt:(h + 1) * Bt].reshape(M, dv) for h in range(H)], axis=-1)
    proj = jnp.dot(ctx_m.astype(jnp.bfloat16), fcw_ref[0],
                   preferred_element_type=jnp.float32) + fcb          # (M, D)

    y = _layernorm(proj + x, ln1g, ln1b, 1e-5) * non_pad              # *= non_pad

    # ---- position-wise FFN --------------------------------------------------
    h1 = jnp.maximum(
        jnp.dot(y.astype(jnp.bfloat16), w1_ref[0],
                preferred_element_type=jnp.float32) + b1, 0.0)        # ReLU
    h2 = jnp.dot(h1.astype(jnp.bfloat16), w2_ref[0],
                 preferred_element_type=jnp.float32) + b2
    z = _layernorm(h2 + y, ln2g, ln2b, 1e-5) * non_pad                # *= non_pad

    out_ref[...] = z            # resident carrier across the layer axis


# ----------------------------- full Encoder fwd ------------------------------

def encoder_forward(object_features, position_features, params,
                    *, num_heads, d_k, d_v):
    # split_image_objects=False, split_position=False, encode_mask=True
    B, S, Df = object_features.shape
    Dp = position_features.shape[2]
    L, H = params["wq"].shape[0], num_heads
    D = params["wq"].shape[2]
    Dh = params["w1"].shape[2]
    Dmax = params["vecs"].shape[2]
    Dfp = Df + Dp
    Hdk, Hdv = H * d_k, H * d_v

    # Batch tiling: fold Bt batch elements into the matmul M axis and amortize
    # the per-layer weight stream over Bt*S rows (target Bt*S >= 256).
    Bt = min(B, max(1, pl.cdiv(256, S)))
    while B % Bt:
        Bt -= 1
    num_tiles = B // Bt
    M = Bt * S
    # TODO(synk): on v7x (2 TCs), prefer num_tiles >= 2 when B is large enough.

    xin = jnp.concatenate([object_features, position_features],
                          axis=-1).reshape(B * S, Dfp)
    nz = jnp.count_nonzero(position_features, axis=2)                 # (B, S)
    non_pad = (nz != 0).astype(jnp.float32).reshape(B * S, 1)
    key_pad = (nz == 0).astype(jnp.float32)                           # (B, S)

    kernel = functools.partial(fused_encoder_kernel, num_heads=H,
                               d_k=d_k, d_v=d_v, batch_tile=Bt, seq_len=S)

    per_layer_tile = (2 * M * D * (2 * Hdk + Hdv)          # q/k/v projections
                      + 2 * H * Bt * S * S * (d_k + d_v)   # scores + context
                      + 2 * M * Hdv * D                    # output projection
                      + 4 * M * D * Dh)                    # FFN
    flops = int(num_tiles * L * per_layer_tile + 2 * B * S * Dfp * D)
    param_bytes = sum(int(v.size) * v.dtype.itemsize for v in params.values())
    bytes_acc = int(xin.size * 4 + non_pad.size * 4 + key_pad.size * 4
                    + num_tiles * param_bytes
                    + B * S * D * 4 + L * H * B * S * S * 2)
    cost = pl.CostEstimate(flops=flops, transcendentals=int(L * B * H * S * S),
                           bytes_accessed=bytes_acc)

    wblk3 = lambda i, j: (j, 0, 0)
    wblk4 = lambda i, j: (j, 0, 0, 0)

    out, attn = pl.pallas_call(
        kernel,
        out_shape=(
            jax.ShapeDtypeStruct((B * S, D), jnp.float32),
            jax.ShapeDtypeStruct((L * H, B, S, S), jnp.bfloat16),
        ),
        grid=(num_tiles, L),
        in_specs=[
            pl.BlockSpec((M, Dfp), lambda i, j: (i, 0)),              # xin
            pl.BlockSpec((M, 1), lambda i, j: (i, 0)),                # non_pad
            pl.BlockSpec((Bt, S), lambda i, j: (i, 0)),               # key_pad
            pl.BlockSpec((Dfp, D), lambda i, j: (0, 0)),              # w_embed (bf16)
            pl.BlockSpec((2, D), lambda i, j: (0, 0)),                # top LN gamma/beta
            pl.BlockSpec((1, H, D, d_k), wblk4),                      # wq (bf16)
            pl.BlockSpec((1, H, D, d_k), wblk4),                      # wk (bf16)
            pl.BlockSpec((1, H, D, d_v), wblk4),                      # wv (bf16)
            pl.BlockSpec((1, Hdv, D), wblk3),                         # fcw (bf16)
            pl.BlockSpec((1, D, Dh), wblk3),                          # w1 (bf16)
            pl.BlockSpec((1, Dh, D), wblk3),                          # w2 (bf16)
            pl.BlockSpec((1, 8, Dmax), wblk3),                        # packed vectors
        ],
        out_specs=(
            pl.BlockSpec((M, D), lambda i, j: (i, 0)),                # residual/output
            pl.BlockSpec((H, Bt, S, S), lambda i, j: (j, i, 0, 0)),   # attn probs
        ),
        scratch_shapes=[pltpu.VMEM((Bt, S, S), jnp.float32)],         # attn bias
        compiler_params=pltpu.CompilerParams(
            dimension_semantics=("parallel", "arbitrary"),
            vmem_limit_bytes=48 * 1024 * 1024),
        cost_estimate=cost,
    )(xin, non_pad, key_pad,
      params["w_embed"], params["norm_gb"],
      params["wq"], params["wk"], params["wv"], params["fcw"],
      params["w1"], params["w2"], params["vecs"])

    out = out.reshape(B, S, D)
    attn = attn.astype(jnp.float32).reshape(L, H, B, S, S).transpose(0, 2, 1, 3, 4)
    attention_list = [attn[i] for i in range(L)]
    return out, attention_list


# --------------------------------- params -----------------------------------

def init_params(key, dim_positions, dim_features, input_size, hidden_size,
                num_blocks, num_heads, d_k, d_v):
    D, Dh, H, L = input_size, hidden_size, num_heads, num_blocks
    Dmax = max(D, Dh)

    def nrm(k, shape, scale=0.05):
        return scale * jax.random.normal(k, shape, jnp.float32)

    keys = iter(jax.random.split(key, 2 + 6 * L))
    w_feat = nrm(next(keys), (dim_features, D))
    w_pos = nrm(next(keys), (dim_positions, D))

    wq, wk, wv, fcw, w1, w2 = [], [], [], [], [], []
    for _ in range(L):
        # head-major q/k/v weights: (H, D, d) so the kernel never slices heads
        wq.append(jnp.transpose(nrm(next(keys), (D, H, d_k)), (1, 0, 2)))
        wk.append(jnp.transpose(nrm(next(keys), (D, H, d_k)), (1, 0, 2)))
        wv.append(jnp.transpose(nrm(next(keys), (D, H, d_v)), (1, 0, 2)))
        fcw.append(nrm(next(keys), (H * d_v, D)))
        w1.append(nrm(next(keys), (D, Dh)))
        w2.append(nrm(next(keys), (Dh, D)))

    # per-layer small vectors packed into one (L, 8, Dmax) f32 array (one DMA):
    # rows: 0=fc bias, 1=ln1 gamma, 2=ln1 beta, 3=ffn b1, 4=ffn b2,
    #       5=ln2 gamma, 6=ln2 beta, 7=pad
    vecs = jnp.zeros((L, 8, Dmax), jnp.float32)
    vecs = vecs.at[:, 1, :D].set(1.0)
    vecs = vecs.at[:, 5, :D].set(1.0)

    return {
        # fused embedding weight: rows [feature_embedding | position_embedding]
        "w_embed": jnp.concatenate([w_feat, w_pos], axis=0).astype(jnp.bfloat16),
        "norm_gb": jnp.concatenate([jnp.ones((1, D), jnp.float32),
                                    jnp.zeros((1, D), jnp.float32)], axis=0),
        "wq": jnp.stack(wq).astype(jnp.bfloat16),      # (L, H, D, dk)
        "wk": jnp.stack(wk).astype(jnp.bfloat16),      # (L, H, D, dk)
        "wv": jnp.stack(wv).astype(jnp.bfloat16),      # (L, H, D, dv)
        "fcw": jnp.stack(fcw).astype(jnp.bfloat16),    # (L, H*dv, D)
        "w1": jnp.stack(w1).astype(jnp.bfloat16),      # (L, D, Dh)
        "w2": jnp.stack(w2).astype(jnp.bfloat16),      # (L, Dh, D)
        "vecs": vecs,                                  # (L, 8, max(D,Dh)) f32
    }


# ----------------------------------- main ------------------------------------

if __name__ == "__main__":
    B, S = 2, 8
    dim_positions, dim_features = 8, 16
    input_size, hidden_size = 32, 64
    num_blocks, num_heads, d_k, d_v = 2, 4, 8, 8

    key = jax.random.PRNGKey(0)
    k_obj, k_pos, k_par = jax.random.split(key, 3)
    object_features = jax.random.normal(k_obj, (B, S, dim_features), jnp.float32)
    position_features = jax.random.normal(k_pos, (B, S, dim_positions), jnp.float32)

    params = init_params(k_par, dim_positions, dim_features, input_size,
                         hidden_size, num_blocks, num_heads, d_k, d_v)

    out, attn_list = encoder_forward(object_features, position_features, params,
                                     num_heads=num_heads, d_k=d_k, d_v=d_v)
    out = jax.block_until_ready(out)
    for a in attn_list:
        jax.block_until_ready(a)

    assert out.shape == (B, S, input_size)
    assert all(a.shape == (B, num_heads, S, S) for a in attn_list)
    # TODO(synk): dropout is treated as inference-mode identity (no RNG in kernel).
    print("KERNEL_OK")
</pallas_src>

<mosaic_0001>
module attributes {stable_mosaic.version = 11 : i64} {
  func.func @fused_encoder_kernel(%arg0: i32, %arg1: i32, %arg2: memref<16x24xf32, #tpu.memory_space<vmem>>, %arg3: memref<16x1xf32, #tpu.memory_space<vmem>>, %arg4: memref<2x8xf32, #tpu.memory_space<vmem>>, %arg5: memref<24x32xbf16, #tpu.memory_space<vmem>>, %arg6: memref<2x32xf32, #tpu.memory_space<vmem>>, %arg7: memref<1x4x32x8xbf16, #tpu.memory_space<vmem>>, %arg8: memref<1x4x32x8xbf16, #tpu.memory_space<vmem>>, %arg9: memref<1x4x32x8xbf16, #tpu.memory_space<vmem>>, %arg10: memref<1x32x32xbf16, #tpu.memory_space<vmem>>, %arg11: memref<1x32x64xbf16, #tpu.memory_space<vmem>>, %arg12: memref<1x64x32xbf16, #tpu.memory_space<vmem>>, %arg13: memref<1x8x64xf32, #tpu.memory_space<vmem>>, %arg14: memref<16x32xf32, #tpu.memory_space<vmem>>, %arg15: memref<4x2x8x8xbf16, #tpu.memory_space<vmem>>, %arg16: memref<2x8x8xf32, #tpu.memory_space<vmem>>) attributes {dimension_semantics = [#tpu.dimension_semantics<parallel>, #tpu.dimension_semantics<arbitrary>], iteration_bounds = array<i64: 1, 2>, scalar_prefetch = 0 : i64, scratch_operands = 1 : i64, tpu.core_type = #tpu.core_type<tc>, window_params = [{transform_indices = @transform_0, window_bounds = array<i64: 16, 24>}, {transform_indices = @transform_1, window_bounds = array<i64: 16, 1>}, {transform_indices = @transform_2, window_bounds = array<i64: 2, 8>}, {pipeline_mode = #tpu.pipeline_mode<synchronous>, transform_indices = @transform_3, window_bounds = array<i64: 24, 32>}, {pipeline_mode = #tpu.pipeline_mode<synchronous>, transform_indices = @transform_4, window_bounds = array<i64: 2, 32>}, {transform_indices = @transform_5, window_bounds = array<i64: 1, 4, 32, 8>}, {transform_indices = @transform_6, window_bounds = array<i64: 1, 4, 32, 8>}, {transform_indices = @transform_7, window_bounds = array<i64: 1, 4, 32, 8>}, {transform_indices = @transform_8, window_bounds = array<i64: 1, 32, 32>}, {transform_indices = @transform_9, window_bounds = array<i64: 1, 32, 64>}, {transform_indices = @transform_10, window_bounds = array<i64: 1, 64, 32>}, {transform_indices = @transform_11, window_bounds = array<i64: 1, 8, 64>}, {transform_indices = @transform_12, window_bounds = array<i64: 16, 32>}, {transform_indices = @transform_13, window_bounds = array<i64: 4, 2, 8, 8>}]} {
    %c0 = arith.constant 0 : index
    %c0_0 = arith.constant 0 : index
    %0 = vector.load %arg3[%c0, %c0_0] : memref<16x1xf32, #tpu.memory_space<vmem>>, vector<16x1xf32>
    %c0_i32 = arith.constant 0 : i32
    %1 = arith.cmpi eq, %arg1, %c0_i32 : i32
    %2 = arith.extui %1 : i1 to i32
    %c0_i32_1 = arith.constant 0 : i32
    %3 = arith.cmpi ne, %2, %c0_i32_1 : i32
    scf.if %3 {
      %c0_58 = arith.constant 0 : index
      %c0_59 = arith.constant 0 : index
      %137 = vector.load %arg2[%c0_58, %c0_59] : memref<16x24xf32, #tpu.memory_space<vmem>>, vector<16x24xf32>
      %138 = arith.truncf %137 : vector<16x24xf32> to vector<16x24xbf16>
      %c0_60 = arith.constant 0 : index
      %c0_61 = arith.constant 0 : index
      %139 = vector.load %arg5[%c0_60, %c0_61] : memref<24x32xbf16, #tpu.memory_space<vmem>>, vector<24x32xbf16>
      %cst_62 = arith.constant dense<0.000000e+00> : vector<16x32xf32>
      %140 = tpu.matmul %138, %139, %cst_62 {dimension_numbers = #tpu.dot_dimension_numbers<[1], [0], [0], [1], [0, 0, 1, 1], [], []>} : vector<16x24xbf16>, vector<24x32xbf16>, vector<16x32xf32> -> vector<16x32xf32>
      %c0_63 = arith.constant 0 : index
      %c0_64 = arith.constant 0 : index
      %141 = vector.load %arg6[%c0_63, %c0_64] : memref<2x32xf32, #tpu.memory_space<vmem>>, vector<1x32xf32>
      %c1 = arith.constant 1 : index
      %c0_65 = arith.constant 0 : index
      %142 = vector.load %arg6[%c1, %c0_65] : memref<2x32xf32, #tpu.memory_space<vmem>>, vector<1x32xf32>
      %cst_66 = arith.constant dense<0.000000e+00> : vector<16xf32>
      %143 = vector.multi_reduction <add>, %140, %cst_66 [1] : vector<16x32xf32> to vector<16xf32>
      %144 = vector.shape_cast %143 : vector<16xf32> to vector<16x1xf32>
      %cst_67 = arith.constant 3.200000e+01 : f32
      %145 = vector.broadcast %cst_67 : f32 to vector<16x1xf32>
      %146 = arith.divf %144, %145 : vector<16x1xf32>
      %147 = vector.broadcast %146 : vector<16x1xf32> to vector<16x32xf32>
      %148 = arith.subf %140, %147 : vector<16x32xf32>
      %149 = arith.mulf %148, %148 : vector<16x32xf32>
      %cst_68 = arith.constant dense<0.000000e+00> : vector<16xf32>
      %150 = vector.multi_reduction <add>, %149, %cst_68 [1] : vector<16x32xf32> to vector<16xf32>
      %151 = vector.shape_cast %150 : vector<16xf32> to vector<16x1xf32>
      %cst_69 = arith.constant 3.200000e+01 : f32
      %152 = vector.broadcast %cst_69 : f32 to vector<16x1xf32>
      %153 = arith.divf %151, %152 : vector<16x1xf32>
      %154 = vector.broadcast %146 : vector<16x1xf32> to vector<16x32xf32>
      %155 = arith.subf %140, %154 : vector<16x32xf32>
      %cst_70 = arith.constant 9.99999997E-7 : f32
      %156 = vector.broadcast %cst_70 : f32 to vector<16x1xf32>
      %157 = arith.addf %153, %156 : vector<16x1xf32>
      %158 = math.rsqrt %157 : vector<16x1xf32>
      %159 = vector.broadcast %158 : vector<16x1xf32> to vector<16x32xf32>
      %160 = arith.mulf %155, %159 : vector<16x32xf32>
      %161 = vector.broadcast %141 : vector<1x32xf32> to vector<16x32xf32>
      %162 = arith.mulf %160, %161 : vector<16x32xf32>
      %163 = vector.broadcast %142 : vector<1x32xf32> to vector<16x32xf32>
      %164 = arith.addf %162, %163 : vector<16x32xf32>
      %c0_71 = arith.constant 0 : index
      %c0_72 = arith.constant 0 : index
      %165 = vector.load %arg14[%c0_71, %c0_72] : memref<16x32xf32, #tpu.memory_space<vmem>>, vector<16x32xf32>
      tpu.vector_store %arg14[%c0_71, %c0_72], %164 {strides = array<i32>} : memref<16x32xf32, #tpu.memory_space<vmem>>, vector<16x32xf32>,
      %166 = tpu.iota {dimensions = array<i32: 0>} : vector<8x8xi32>
      %167 = tpu.iota {dimensions = array<i32: 1>} : vector<8x8xi32>
      %168 = arith.cmpi sgt, %167, %166 : vector<8x8xi32>
      %169 = vector.shape_cast %168 : vector<8x8xi1> to vector<1x8x8xi1>
      %c0_73 = arith.constant 0 : index
      %c0_74 = arith.constant 0 : index
      %170 = vector.load %arg4[%c0_73, %c0_74] : memref<2x8xf32, #tpu.memory_space<vmem>>, vector<2x8xf32>
      %cst_75 = arith.constant 0.000000e+00 : f32
      %171 = vector.broadcast %cst_75 : f32 to vector<2x8xf32>
      %172 = arith.cmpf ogt, %170, %171 : vector<2x8xf32>
      %173 = vector.shape_cast %172 : vector<2x8xi1> to vector<2x1x8xi1>
      %174 = vector.broadcast %169 : vector<1x8x8xi1> to vector<2x8x8xi1>
      %175 = vector.broadcast %173 : vector<2x1x8xi1> to vector<2x8x8xi1>
      %176 = arith.ori %174, %175 : vector<2x8x8xi1>
      %cst_76 = arith.constant -1.000000e+30 : f32
      %cst_77 = arith.constant 0.000000e+00 : f32
      %177 = vector.broadcast %cst_76 : f32 to vector<2x8x8xf32>
      %178 = vector.broadcast %cst_77 : f32 to vector<2x8x8xf32>
      %179 = arith.select %176, %177, %178 : vector<2x8x8xi1>, vector<2x8x8xf32>
      %c0_78 = arith.constant 0 : index
      %c0_79 = arith.constant 0 : index
      %c0_80 = arith.constant 0 : index
      %180 = vector.load %arg16[%c0_78, %c0_79, %c0_80] : memref<2x8x8xf32, #tpu.memory_space<vmem>>, vector<2x8x8xf32>
      tpu.vector_store %arg16[%c0_78, %c0_79, %c0_80], %179 {strides = array<i32>} : memref<2x8x8xf32, #tpu.memory_space<vmem>>, vector<2x8x8xf32>,
    } else {
    }
    %c0_2 = arith.constant 0 : index
    %c0_3 = arith.constant 0 : index
    %4 = vector.load %arg14[%c0_2, %c0_3] : memref<16x32xf32, #tpu.memory_space<vmem>>, vector<16x32xf32>
    %5 = arith.truncf %4 : vector<16x32xf32> to vector<16x32xbf16>
    %c0_4 = arith.constant 0 : index
    %c0_5 = arith.constant 0 : index
    %c0_6 = arith.constant 0 : index
    %6 = vector.load %arg13[%c0_4, %c0_5, %c0_6] : memref<1x8x64xf32, #tpu.memory_space<vmem>>, vector<1x8x64xf32>
    %7 = vector.shape_cast %6 : vector<1x8x64xf32> to vector<8x64xf32>
    %8 = vector.extract_strided_slice %7 {offsets = [0, 0], sizes = [1, 32], strides = [1, 1]} : vector<8x64xf32> to vector<1x32xf32>
    %9 = vector.extract_strided_slice %7 {offsets = [1, 0], sizes = [1, 32], strides = [1, 1]} : vector<8x64xf32> to vector<1x32xf32>
    %10 = vector.extract_strided_slice %7 {offsets = [2, 0], sizes = [1, 32], strides = [1, 1]} : vector<8x64xf32> to vector<1x32xf32>
    %11 = vector.extract_strided_slice %7 {offsets = [3, 0], sizes = [1, 64], strides = [1, 1]} : vector<8x64xf32> to vector<1x64xf32>
    %12 = vector.extract_strided_slice %7 {offsets = [4, 0], sizes = [1, 32], strides = [1, 1]} : vector<8x64xf32> to vector<1x32xf32>
    %13 = vector.extract_strided_slice %7 {offsets = [5, 0], sizes = [1, 32], strides = [1, 1]} : vector<8x64xf32> to vector<1x32xf32>
    %14 = vector.extract_strided_slice %7 {offsets = [6, 0], sizes = [1, 32], strides = [1, 1]} : vector<8x64xf32> to vector<1x32xf32>
    %15 = vector.shape_cast %5 : vector<16x32xbf16> to vector<1x16x32xbf16>
    %16 = vector.shape_cast %15 : vector<1x16x32xbf16> to vector<1x16x32xbf16>
    %17 = vector.broadcast %16 : vector<1x16x32xbf16> to vector<4x16x32xbf16>
    %c0_7 = arith.constant 0 : index
    %c0_8 = arith.constant 0 : index
    %c0_9 = arith.constant 0 : index
    %c0_10 = arith.constant 0 : index
    %18 = vector.load %arg7[%c0_7, %c0_8, %c0_9, %c0_10] : memref<1x4x32x8xbf16, #tpu.memory_space<vmem>>, vector<1x4x32x8xbf16>
    %19 = vector.shape_cast %18 : vector<1x4x32x8xbf16> to vector<4x32x8xbf16>
    "tpu.trace_start"() <{level = 10 : i32, message = "hmd,hdk->hmk"}> : () -> ()
    %cst = arith.constant dense<0.000000e+00> : vector<4x16x8xf32>
    %20 = tpu.matmul %17, %19, %cst {dimension_numbers = #tpu.dot_dimension_numbers<[2], [1], [1], [2], [0, 0, 0, 1, 1, 2], [0], [0]>} : vector<4x16x32xbf16>, vector<4x32x8xbf16>, vector<4x16x8xf32> -> vector<4x16x8xf32>
    "tpu.trace_stop"() : () -> ()
    %c0_11 = arith.constant 0 : index
    %c0_12 = arith.constant 0 : index
    %c0_13 = arith.constant 0 : index
    %c0_14 = arith.constant 0 : index
    %21 = vector.load %arg8[%c0_11, %c0_12, %c0_13, %c0_14] : memref<1x4x32x8xbf16, #tpu.memory_space<vmem>>, vector<1x4x32x8xbf16>
    %22 = vector.shape_cast %21 : vector<1x4x32x8xbf16> to vector<4x32x8xbf16>
    "tpu.trace_start"() <{level = 10 : i32, message = "hmd,hdk->hmk"}> : () -> ()
    %cst_15 = arith.constant dense<0.000000e+00> : vector<4x16x8xf32>
    %23 = tpu.matmul %17, %22, %cst_15 {dimension_numbers = #tpu.dot_dimension_numbers<[2], [1], [1], [2], [0, 0, 0, 1, 1, 2], [0], [0]>} : vector<4x16x32xbf16>, vector<4x32x8xbf16>, vector<4x16x8xf32> -> vector<4x16x8xf32>
    "tpu.trace_stop"() : () -> ()
    %c0_16 = arith.constant 0 : index
    %c0_17 = arith.constant 0 : index
    %c0_18 = arith.constant 0 : index
    %c0_19 = arith.constant 0 : index
    %24 = vector.load %arg9[%c0_16, %c0_17, %c0_18, %c0_19] : memref<1x4x32x8xbf16, #tpu.memory_space<vmem>>, vector<1x4x32x8xbf16>
    %25 = vector.shape_cast %24 : vector<1x4x32x8xbf16> to vector<4x32x8xbf16>
    "tpu.trace_start"() <{level = 10 : i32, message = "hmd,hdk->hmk"}> : () -> ()
    %cst_20 = arith.constant dense<0.000000e+00> : vector<4x16x8xf32>
    %26 = tpu.matmul %17, %25, %cst_20 {dimension_numbers = #tpu.dot_dimension_numbers<[2], [1], [1], [2], [0, 0, 0, 1, 1, 2], [0], [0]>} : vector<4x16x32xbf16>, vector<4x32x8xbf16>, vector<4x16x8xf32> -> vector<4x16x8xf32>
    "tpu.trace_stop"() : () -> ()
    %27 = vector.shape_cast %20 : vector<4x16x8xf32> to vector<8x8x8xf32>
    %28 = arith.truncf %27 : vector<8x8x8xf32> to vector<8x8x8xbf16>
    %29 = vector.shape_cast %23 : vector<4x16x8xf32> to vector<8x8x8xf32>
    %30 = arith.truncf %29 : vector<8x8x8xf32> to vector<8x8x8xbf16>
    %31 = vector.shape_cast %26 : vector<4x16x8xf32> to vector<8x8x8xf32>
    %32 = arith.truncf %31 : vector<8x8x8xf32> to vector<8x8x8xbf16>
    "tpu.trace_start"() <{level = 10 : i32, message = "gqd,gkd->gqk"}> : () -> ()
    %cst_21 = arith.constant dense<0.000000e+00> : vector<8x8x8xf32>
    %33 = tpu.matmul %28, %30, %cst_21 {dimension_numbers = #tpu.dot_dimension_numbers<[2], [2], [1], [1], [0, 0, 0, 1, 1, 1], [0], [0]>} : vector<8x8x8xbf16>, vector<8x8x8xbf16>, vector<8x8x8xf32> -> vector<8x8x8xf32>
    "tpu.trace_stop"() : () -> ()
    %cst_22 = arith.constant 0.353553385 : f32
    %34 = vector.broadcast %cst_22 : f32 to vector<8x8x8xf32>
    %35 = arith.mulf %33, %34 : vector<8x8x8xf32>
    %c0_23 = arith.constant 0 : index
    %c0_24 = arith.constant 0 : index
    %c0_25 = arith.constant 0 : index
    %36 = vector.load %arg16[%c0_23, %c0_24, %c0_25] : memref<2x8x8xf32, #tpu.memory_space<vmem>>, vector<2x8x8xf32>
    %37 = vector.shape_cast %36 : vector<2x8x8xf32> to vector<1x2x8x8xf32>
    %38 = vector.shape_cast %37 : vector<1x2x8x8xf32> to vector<1x2x8x8xf32>
    %39 = vector.broadcast %38 : vector<1x2x8x8xf32> to vector<4x2x8x8xf32>
    %40 = vector.shape_cast %39 : vector<4x2x8x8xf32> to vector<8x8x8xf32>
    %41 = arith.addf %35, %40 : vector<8x8x8xf32>
    %cst_26 = arith.constant dense<0xFF800000> : vector<8x8xf32>
    %42 = vector.multi_reduction <maximumf>, %41, %cst_26 [2] : vector<8x8x8xf32> to vector<8x8xf32>
    %43 = vector.shape_cast %42 : vector<8x8xf32> to vector<8x8x1xf32>
    %44 = vector.broadcast %43 : vector<8x8x1xf32> to vector<8x8x8xf32>
    %45 = arith.subf %41, %44 : vector<8x8x8xf32>
    %46 = math.exp %45 : vector<8x8x8xf32>
    %cst_27 = arith.constant dense<0.000000e+00> : vector<8x8xf32>
    %47 = vector.multi_reduction <add>, %46, %cst_27 [2] : vector<8x8x8xf32> to vector<8x8xf32>
    %48 = vector.shape_cast %47 : vector<8x8xf32> to vector<8x8x1xf32>
    %49 = tpu.reciprocal %48 {approx = true} : vector<8x8x1xf32> -> vector<8x8x1xf32>
    %50 = vector.broadcast %49 : vector<8x8x1xf32> to vector<8x8x8xf32>
    %51 = arith.mulf %46, %50 : vector<8x8x8xf32>
    %52 = vector.shape_cast %51 : vector<8x8x8xf32> to vector<4x2x8x8xf32>
    %53 = arith.truncf %52 : vector<4x2x8x8xf32> to vector<4x2x8x8xbf16>
    %c0_28 = arith.constant 0 : index
    %c0_29 = arith.constant 0 : index
    %c0_30 = arith.constant 0 : index
    %c0_31 = arith.constant 0 : index
    %54 = vector.load %arg15[%c0_28, %c0_29, %c0_30, %c0_31] : memref<4x2x8x8xbf16, #tpu.memory_space<vmem>>, vector<4x2x8x8xbf16>
    tpu.vector_store %arg15[%c0_28, %c0_29, %c0_30, %c0_31], %53 {strides = array<i32>} : memref<4x2x8x8xbf16, #tpu.memory_space<vmem>>, vector<4x2x8x8xbf16>,
    %55 = arith.truncf %51 : vector<8x8x8xf32> to vector<8x8x8xbf16>
    "tpu.trace_start"() <{level = 10 : i32, message = "gqk,gkd->gqd"}> : () -> ()
    %cst_32 = arith.constant dense<0.000000e+00> : vector<8x8x8xf32>
    %56 = tpu.matmul %55, %32, %cst_32 {dimension_numbers = #tpu.dot_dimension_numbers<[2], [1], [1], [2], [0, 0, 0, 1, 1, 2], [0], [0]>} : vector<8x8x8xbf16>, vector<8x8x8xbf16>, vector<8x8x8xf32> -> vector<8x8x8xf32>
    "tpu.trace_stop"() : () -> ()
    %57 = vector.extract_strided_slice %56 {offsets = [0, 0, 0], sizes = [2, 8, 8], strides = [1, 1, 1]} : vector<8x8x8xf32> to vector<2x8x8xf32>
    %58 = vector.shape_cast %57 : vector<2x8x8xf32> to vector<16x8xf32>
    %59 = vector.extract_strided_slice %56 {offsets = [2, 0, 0], sizes = [2, 8, 8], strides = [1, 1, 1]} : vector<8x8x8xf32> to vector<2x8x8xf32>
    %60 = vector.shape_cast %59 : vector<2x8x8xf32> to vector<16x8xf32>
    %61 = vector.extract_strided_slice %56 {offsets = [4, 0, 0], sizes = [2, 8, 8], strides = [1, 1, 1]} : vector<8x8x8xf32> to vector<2x8x8xf32>
    %62 = vector.shape_cast %61 : vector<2x8x8xf32> to vector<16x8xf32>
    %63 = vector.extract_strided_slice %56 {offsets = [6, 0, 0], sizes = [2, 8, 8], strides = [1, 1, 1]} : vector<8x8x8xf32> to vector<2x8x8xf32>
    %64 = vector.shape_cast %63 : vector<2x8x8xf32> to vector<16x8xf32>
    %65 = tpu.concatenate %58, %60, %62, %64 in 1 : vector<16x8xf32>, vector<16x8xf32>, vector<16x8xf32>, vector<16x8xf32> -> vector<16x32xf32>
    %66 = arith.truncf %65 : vector<16x32xf32> to vector<16x32xbf16>
    %c0_33 = arith.constant 0 : index
    %c0_34 = arith.constant 0 : index
    %c0_35 = arith.constant 0 : index
    %67 = vector.load %arg10[%c0_33, %c0_34, %c0_35] : memref<1x32x32xbf16, #tpu.memory_space<vmem>>, vector<1x32x32xbf16>
    %68 = vector.shape_cast %67 : vector<1x32x32xbf16> to vector<32x32xbf16>
    %cst_36 = arith.constant dense<0.000000e+00> : vector<16x32xf32>
    %69 = tpu.matmul %66, %68, %cst_36 {dimension_numbers = #tpu.dot_dimension_numbers<[1], [0], [0], [1], [0, 0, 1, 1], [], []>} : vector<16x32xbf16>, vector<32x32xbf16>, vector<16x32xf32> -> vector<16x32xf32>
    %70 = vector.broadcast %8 : vector<1x32xf32> to vector<16x32xf32>
    %71 = arith.addf %69, %70 : vector<16x32xf32>
    %72 = arith.addf %71, %4 : vector<16x32xf32>
    %cst_37 = arith.constant dense<0.000000e+00> : vector<16xf32>
    %73 = vector.multi_reduction <add>, %72, %cst_37 [1] : vector<16x32xf32> to vector<16xf32>
    %74 = vector.shape_cast %73 : vector<16xf32> to vector<16x1xf32>
    %cst_38 = arith.constant 3.200000e+01 : f32
    %75 = vector.broadcast %cst_38 : f32 to vector<16x1xf32>
    %76 = arith.divf %74, %75 : vector<16x1xf32>
    %77 = vector.broadcast %76 : vector<16x1xf32> to vector<16x32xf32>
    %78 = arith.subf %72, %77 : vector<16x32xf32>
    %79 = arith.mulf %78, %78 : vector<16x32xf32>
    %cst_39 = arith.constant dense<0.000000e+00> : vector<16xf32>
    %80 = vector.multi_reduction <add>, %79, %cst_39 [1] : vector<16x32xf32> to vector<16xf32>
    %81 = vector.shape_cast %80 : vector<16xf32> to vector<16x1xf32>
    %cst_40 = arith.constant 3.200000e+01 : f32
    %82 = vector.broadcast %cst_40 : f32 to vector<16x1xf32>
    %83 = arith.divf %81, %82 : vector<16x1xf32>
    %84 = vector.broadcast %76 : vector<16x1xf32> to vector<16x32xf32>
    %85 = arith.subf %72, %84 : vector<16x32xf32>
    %cst_41 = arith.constant 9.99999974E-6 : f32
    %86 = vector.broadcast %cst_41 : f32 to vector<16x1xf32>
    %87 = arith.addf %83, %86 : vector<16x1xf32>
    %88 = math.rsqrt %87 : vector<16x1xf32>
    %89 = vector.broadcast %88 : vector<16x1xf32> to vector<16x32xf32>
    %90 = arith.mulf %85, %89 : vector<16x32xf32>
    %91 = vector.broadcast %9 : vector<1x32xf32> to vector<16x32xf32>
    %92 = arith.mulf %90, %91 : vector<16x32xf32>
    %93 = vector.broadcast %10 : vector<1x32xf32> to vector<16x32xf32>
    %94 = arith.addf %92, %93 : vector<16x32xf32>
    %95 = vector.broadcast %0 : vector<16x1xf32> to vector<16x32xf32>
    %96 = arith.mulf %94, %95 : vector<16x32xf32>
    %97 = arith.truncf %96 : vector<16x32xf32> to vector<16x32xbf16>
    %c0_42 = arith.constant 0 : index
    %c0_43 = arith.constant 0 : index
    %c0_44 = arith.constant 0 : index
    %98 = vector.load %arg11[%c0_42, %c0_43, %c0_44] : memref<1x32x64xbf16, #tpu.memory_space<vmem>>, vector<1x32x64xbf16>
    %99 = vector.shape_cast %98 : vector<1x32x64xbf16> to vector<32x64xbf16>
    %cst_45 = arith.constant dense<0.000000e+00> : vector<16x64xf32>
    %100 = tpu.matmul %97, %99, %cst_45 {dimension_numbers = #tpu.dot_dimension_numbers<[1], [0], [0], [1], [0, 0, 1, 1], [], []>} : vector<16x32xbf16>, vector<32x64xbf16>, vector<16x64xf32> -> vector<16x64xf32>
    %101 = vector.broadcast %11 : vector<1x64xf32> to vector<16x64xf32>
    %102 = arith.addf %100, %101 : vector<16x64xf32>
    %cst_46 = arith.constant 0.000000e+00 : f32
    %103 = vector.broadcast %cst_46 : f32 to vector<16x64xf32>
    %104 = arith.maximumf %102, %103 : vector<16x64xf32>
    %105 = arith.truncf %104 : vector<16x64xf32> to vector<16x64xbf16>
    %c0_47 = arith.constant 0 : index
    %c0_48 = arith.constant 0 : index
    %c0_49 = arith.constant 0 : index
    %106 = vector.load %arg12[%c0_47, %c0_48, %c0_49] : memref<1x64x32xbf16, #tpu.memory_space<vmem>>, vector<1x64x32xbf16>
    %107 = vector.shape_cast %106 : vector<1x64x32xbf16> to vector<64x32xbf16>
    %cst_50 = arith.constant dense<0.000000e+00> : vector<16x32xf32>
    %108 = tpu.matmul %105, %107, %cst_50 {dimension_numbers = #tpu.dot_dimension_numbers<[1], [0], [0], [1], [0, 0, 1, 1], [], []>} : vector<16x64xbf16>, vector<64x32xbf16>, vector<16x32xf32> -> vector<16x32xf32>
    %109 = vector.broadcast %12 : vector<1x32xf32> to vector<16x32xf32>
    %110 = arith.addf %108, %109 : vector<16x32xf32>
    %111 = arith.addf %110, %96 : vector<16x32xf32>
    %cst_51 = arith.constant dense<0.000000e+00> : vector<16xf32>
    %112 = vector.multi_reduction <add>, %111, %cst_51 [1] : vector<16x32xf32> to vector<16xf32>
    %113 = vector.shape_cast %112 : vector<16xf32> to vector<16x1xf32>
    %cst_52 = arith.constant 3.200000e+01 : f32
    %114 = vector.broadcast %cst_52 : f32 to vector<16x1xf32>
    %115 = arith.divf %113, %114 : vector<16x1xf32>
    %116 = vector.broadcast %115 : vector<16x1xf32> to vector<16x32xf32>
    %117 = arith.subf %111, %116 : vector<16x32xf32>
    %118 = arith.mulf %117, %117 : vector<16x32xf32>
    %cst_53 = arith.constant dense<0.000000e+00> : vector<16xf32>
    %119 = vector.multi_reduction <add>, %118, %cst_53 [1] : vector<16x32xf32> to vector<16xf32>
    %120 = vector.shape_cast %119 : vector<16xf32> to vector<16x1xf32>
    %cst_54 = arith.constant 3.200000e+01 : f32
    %121 = vector.broadcast %cst_54 : f32 to vector<16x1xf32>
    %122 = arith.divf %120, %121 : vector<16x1xf32>
    %123 = vector.broadcast %115 : vector<16x1xf32> to vector<16x32xf32>
    %124 = arith.subf %111, %123 : vector<16x32xf32>
    %cst_55 = arith.constant 9.99999974E-6 : f32
    %125 = vector.broadcast %cst_55 : f32 to vector<16x1xf32>
    %126 = arith.addf %122, %125 : vector<16x1xf32>
    %127 = math.rsqrt %126 : vector<16x1xf32>
    %128 = vector.broadcast %127 : vector<16x1xf32> to vector<16x32xf32>
    %129 = arith.mulf %124, %128 : vector<16x32xf32>
    %130 = vector.broadcast %13 : vector<1x32xf32> to vector<16x32xf32>
    %131 = arith.mulf %129, %130 : vector<16x32xf32>
    %132 = vector.broadcast %14 : vector<1x32xf32> to vector<16x32xf32>
    %133 = arith.addf %131, %132 : vector<16x32xf32>
    %134 = vector.broadcast %0 : vector<16x1xf32> to vector<16x32xf32>
    %135 = arith.mulf %133, %134 : vector<16x32xf32>
    %c0_56 = arith.constant 0 : index
    %c0_57 = arith.constant 0 : index
    %136 = vector.load %arg14[%c0_56, %c0_57] : memref<16x32xf32, #tpu.memory_space<vmem>>, vector<16x32xf32>
    tpu.vector_store %arg14[%c0_56, %c0_57], %135 {strides = array<i32>} : memref<16x32xf32, #tpu.memory_space<vmem>>, vector<16x32xf32>,
    return
  }
  func.func @transform_0(%arg0: i32, %arg1: i32) -> (i32, i32) {
    %c0_i32 = arith.constant 0 : i32
    %c0_i32_0 = arith.constant 0 : i32
    return %arg0, %c0_i32 : i32, i32
  }
  func.func @transform_1(%arg0: i32, %arg1: i32) -> (i32, i32) {
    %c0_i32 = arith.constant 0 : i32
    %c0_i32_0 = arith.constant 0 : i32
    return %arg0, %c0_i32 : i32, i32
  }
  func.func @transform_2(%arg0: i32, %arg1: i32) -> (i32, i32) {
    %c0_i32 = arith.constant 0 : i32
    %c0_i32_0 = arith.constant 0 : i32
    return %arg0, %c0_i32 : i32, i32
  }
  func.func @transform_3(%arg0: i32, %arg1: i32) -> (i32, i32) {
    %c0_i32 = arith.constant 0 : i32
    %c0_i32_0 = arith.constant 0 : i32
    %c0_i32_1 = arith.constant 0 : i32
    return %c0_i32, %c0_i32_0 : i32, i32
  }
  func.func @transform_4(%arg0: i32, %arg1: i32) -> (i32, i32) {
    %c0_i32 = arith.constant 0 : i32
    %c0_i32_0 = arith.constant 0 : i32
    %c0_i32_1 = arith.constant 0 : i32
    return %c0_i32, %c0_i32_0 : i32, i32
  }
  func.func @transform_5(%arg0: i32, %arg1: i32) -> (i32, i32, i32, i32) {
    %c0_i32 = arith.constant 0 : i32
    %c0_i32_0 = arith.constant 0 : i32
    %c0_i32_1 = arith.constant 0 : i32
    %c0_i32_2 = arith.constant 0 : i32
    return %arg1, %c0_i32, %c0_i32_0, %c0_i32_1 : i32, i32, i32, i32
  }
  func.func @transform_6(%arg0: i32, %arg1: i32) -> (i32, i32, i32, i32) {
    %c0_i32 = arith.constant 0 : i32
    %c0_i32_0 = arith.constant 0 : i32
    %c0_i32_1 = arith.constant 0 : i32
    %c0_i32_2 = arith.constant 0 : i32
    return %arg1, %c0_i32, %c0_i32_0, %c0_i32_1 : i32, i32, i32, i32
  }
  func.func @transform_7(%arg0: i32, %arg1: i32) -> (i32, i32, i32, i32) {
    %c0_i32 = arith.constant 0 : i32
    %c0_i32_0 = arith.constant 0 : i32
    %c0_i32_1 = arith.constant 0 : i32
    %c0_i32_2 = arith.constant 0 : i32
    return %arg1, %c0_i32, %c0_i32_0, %c0_i32_1 : i32, i32, i32, i32
  }
  func.func @transform_8(%arg0: i32, %arg1: i32) -> (i32, i32, i32) {
    %c0_i32 = arith.constant 0 : i32
    %c0_i32_0 = arith.constant 0 : i32
    %c0_i32_1 = arith.constant 0 : i32
    return %arg1, %c0_i32, %c0_i32_0 : i32, i32, i32
  }
  func.func @transform_9(%arg0: i32, %arg1: i32) -> (i32, i32, i32) {
    %c0_i32 = arith.constant 0 : i32
    %c0_i32_0 = arith.constant 0 : i32
    %c0_i32_1 = arith.constant 0 : i32
    return %arg1, %c0_i32, %c0_i32_0 : i32, i32, i32
  }
  func.func @transform_10(%arg0: i32, %arg1: i32) -> (i32, i32, i32) {
    %c0_i32 = arith.constant 0 : i32
    %c0_i32_0 = arith.constant 0 : i32
    %c0_i32_1 = arith.constant 0 : i32
    return %arg1, %c0_i32, %c0_i32_0 : i32, i32, i32
  }
  func.func @transform_11(%arg0: i32, %arg1: i32) -> (i32, i32, i32) {
    %c0_i32 = arith.constant 0 : i32
    %c0_i32_0 = arith.constant 0 : i32
    %c0_i32_1 = arith.constant 0 : i32
    return %arg1, %c0_i32, %c0_i32_0 : i32, i32, i32
  }
  func.func @transform_12(%arg0: i32, %arg1: i32) -> (i32, i32) {
    %c0_i32 = arith.constant 0 : i32
    %c0_i32_0 = arith.constant 0 : i32
    return %arg0, %c0_i32 : i32, i32
  }
  func.func @transform_13(%arg0: i32, %arg1: i32) -> (i32, i32, i32, i32) {
    %c0_i32 = arith.constant 0 : i32
    %c0_i32_0 = arith.constant 0 : i32
    %c0_i32_1 = arith.constant 0 : i32
    return %arg1, %arg0, %c0_i32, %c0_i32_0 : i32, i32, i32, i32
  }
}

</mosaic_0001>

<bundles_post_ra>
// kernel: tpu_custom_call.1
= control target key start
LH: loop header
LB: loop body
LE: loop exit
PB: predicated region body
PF: predicated region fallthrough
CT: control target
= control target key end

     0   :  { %s4301_s0 = inlined_call_operand.vmem [shape: f32[16,24], index: 0, kind: input, shape index: {}]   ;;  %s4302_s1 = inlined_call_operand.vmem [shape: f32[16,1], index: 1, kind: input, shape index: {}]   ;;  %s4303_s2 = inlined_call_operand.vmem [shape: f32[2,8], index: 2, kind: input, shape index: {}]   ;;  %s4304_s3 = inlined_call_operand.vmem [shape: bf16[24,32], index: 3, kind: input, shape index: {}]   ;;  %s4305_s4 = inlined_call_operand.vmem [shape: f32[2,32], index: 4, kind: input, shape index: {}]   ;;  %s4306_s5 = inlined_call_operand.vmem [shape: bf16[2,4,32,8], index: 5, kind: input, shape index: {}]   ;;  %s4307_s6 = inlined_call_operand.vmem [shape: bf16[2,4,32,8], index: 6, kind: input, shape index: {}]   ;;  %s4308_s7 = inlined_call_operand.vmem [shape: bf16[2,4,32,8], index: 7, kind: input, shape index: {}]   ;;  %s4309_s8 = inlined_call_operand.vmem [shape: bf16[2,32,32], index: 8, kind: input, shape index: {}]   ;;  %s4310_s9 = inlined_call_operand.vmem [shape: bf16[2,32,64], index: 9, kind: input, shape index: {}]   ;;  %s4311_s10 = inlined_call_operand.vmem [shape: bf16[2,64,32], index: 10, kind: input, shape index: {}]   ;;  %s4312_s11 = inlined_call_operand.vmem [shape: f32[2,8,64], index: 11, kind: input, shape index: {}]   ;;  %s4313_s12 = inlined_call_operand.hbm [shape: f32[16,32], index: 12, kind: output, shape index: {0}]   ;;  %s4314_s13 = inlined_call_operand.hbm [shape: bf16[8,2,8,8], index: 13, kind: output, shape index: {1}]  }
   0x1   :  { %4329 = sst [smem:[#allocation18_spill]] %s4302_s1 }
   0x2   :  { %4330 = sst [smem:[#allocation19_spill]] %s4306_s5 }
   0x3   :  { %4331 = sst [smem:[#allocation20_spill]] %s4307_s6 }
   0x4   :  { %4332 = sst [smem:[#allocation21_spill]] %s4313_s12 }
   0x5   :  { %4333 = sst [smem:[#allocation22_spill]] %s4314_s13 }
   0x6   :  { %19 = vsyncpa [#allocation4], 0 }
   0x7   :  { %20 = vsyncpa [#allocation6], 0 }
   0x8   :  { %22 = vsyncpa [#allocation6 + $0x1], 0  ;;  %s3748_s25 = smov 0   ;;  %s3750_s26 = smov 0  }
   0x9   :  { %s3752_s27 = smov 0   ;;  %s3754_s28 = smov 0  }
   0xa   :  { %s3756_s29 = smov 0   ;;  %s3758_s30 = smov 0  }
   0xb LB: > { %4334 = sst [smem:[#allocation9_spill]] %s3641_s25  ;;  %s2964_s14 = sadd.s32 4294967295, %s3661_s30   ;;  %s3661_s30 = sphi %s3758_s30, %s28_s30   ;;  %s3657_s29 = sphi %s3756_s29, %s4360_s29   ;;  %s3653_s28 = sphi %s3754_s28, %s4359_s28   ;;  %s3649_s27 = sphi %s3752_s27, %s4358_s27   ;;  %s3645_s26 = sphi %s3750_s26, %s4362_s26   ;;  %s3641_s25 = sphi %s3748_s25, %s4361_s25  }
   0xc   : > { %4335 = sst [smem:[#allocation10_spill]] %s3649_s27  ;;  %s2965_s15 = sadd.s32 4294967294, %s3661_s30  }
   0xd   : > { %4336 = sst [smem:[#allocation11_spill]] %s3657_s29  ;;  %s37_s16 = sadd.s32 1, %s3657_s29 }
   0xe   : > { %4337 = sst [smem:[#allocation12_spill]] %s3661_s30  ;;  %s377_s17 = sadd.s32 1, %s3649_s27 }
   0xf   : > { %p38_p0 = scmp.ge.s32.totalorder %s37_s16, 2  ;;  %p387_p1 = scmp.ne.s32.totalorder %s3649_s27, %s3645_s26 }
  0x10   : > { %p3784_p2 = scmp.eq.s32.totalorder %s2964_s14, 1  ;;  %p393_p3 = scmp.ne.s32.totalorder %s3645_s26, %s3641_s25 }
  0x11   : > { %s4364_s16 = smov (%p38_p0, %s37_s16), 0  ;;  %p394_p5 = scmp.eq.s32.totalorder %s2965_s15, 1 }
  0x12   : > { %s4338_s18 = scalar_select %p3784_p2, 1, 0 }
  0x13   : > { %4340 = sst [smem:[#allocation14_spill]] %s4364_s16  ;;  %p3794_p4 = por %p3784_p2, %p387_p1 }
  0x14   : > { %4339 = sst [smem:[#allocation13_spill]] %s4338_s18  ;;  %s372_s20 = ssub.s32 %s3657_s29, %s4364_s16 }
  0x15   : > { %s4341_s19 = scalar_select %p3794_p4, 1, 0 }
  0x16   : > { %p2971_p6 = scmp.ge.s32.totalorder %s3661_s30, 1  ;;  %p375_p7 = scmp.eq.s32.totalorder %s372_s20, 0 }
  0x17   : > { %4342 = sst [smem:[#allocation15_spill]] %s4341_s19  ;;  %p3801_p8 = por %p394_p5, %p393_p3 }
  0x18   : > { %p498_p9 = scmp.lt.s32.totalorder %s3661_s30, 3 }
  0x19   : > { %s4343_s21 = scalar_select %p3801_p8, 1, 0 }
  0x1a   : > { %s3807_s22 = scalar_select %p375_p7, %s3649_s27, %s377_s17  }
  0x1b   : > { %4344 = sst [smem:[#allocation16_spill]] %s4343_s21  ;;  %p499_p10 = pnand %p2971_p6, %p498_p9 }
  0x1c   : > { %4345 = sst [smem:[#allocation17_spill]] %s3807_s22  ;;  %s4325_s23 = sand.u32 (!%p499_p10), 1, %s3645_s26  }
  0x1d   : > { %502 = sbr.rel (%p499_p10) target bundleno = 3031 (0xbd7), region = 68  ;;  %p601_p11 = scmp.lt.s32.totalorder (!%p499_p10), %s3653_s28, 1 }
  0x1e   : > { %s4346_s1 = sld [smem:[#allocation18_spill]] (!%p499_p10)  ;;  %s2972_s17 = sshll.u32 (!%p499_p10), %s4325_s23, 5 }
  0x1f   : > { %s4347_s5 = sld [smem:[#allocation19_spill]] (!%p499_p10)  ;;  %s4348_s6 = sld [smem:[#allocation20_spill]] (!%p499_p10) }
  0x20   : > { %s3859_s23 = scalar_lea.vmem (!%p499_p10), [#allocation5], %s2972_s17  ;;  %p2986_p12 = scmp.ne.s32.totalorder (!%p499_p10), %s3653_s28, 0 }
  0x24   : > { %v3814_v0 = vld [vmem:[%s4346_s1] sm:$0xff]  ;;  %v3819_v1 = vld [vmem:[%s4346_s1 + $0x8] sm:$0xff]  ;;  %s602_s16 = scalar_select %p601_p11, %s3653_s28, 1 }
  0x25   : > { %644 = sbr.rel (%p2986_p12) target bundleno = 576 (0x240), region = 72  ;;  %v753_v2 = vlaneseq (!%p2986_p12)  ;;  %v758_v3 = vld [vmem:[%s4303_s2] sm:$0x3] (!%p2986_p12)  ;;  %v3663_v4 = vmov (!%p2986_p12), 0.0   ;;  %v3664_v5 = vmov (!%p2986_p12), 1966171168  }
  0x26   : > { %s3063_s29 = sshll.u32 %s602_s16, 6  ;;  %s3066_s22 = sshll.u32 %s602_s16, 4  ;;  %3153 = vmatprep.subr.bf16.mxu0 (!%p2986_p12), %v3663_v4  ;;  %vm759_vm0 = vcmp.gt.f32.partialorder (!%p2986_p12), %v758_v3, 0.0  ;;  %v762_v6 = vunpack.c.l.s4 (!%p2986_p12), %v3664_v5  ;;  %v3456_v8 = vld [vmem:[%s4304_s3] sm:$0xff] (!%p2986_p12)   ;;  %v3457_v10 = vld [vmem:[%s4304_s3 + $0x8] ss:$0 sps:$4 sm:$0xff] (!%p2986_p12)  }
  0x27   : > { %s3827_s25 = scalar_lea.vmem %s4347_s5, %s3063_s29  ;;  %s3832_s24 = scalar_lea.vmem %s4348_s6, %s3063_s29  ;;  %v754_v7 = vshrl.u32 (!%p2986_p12), %v753_v2, 7  ;;  %vm664_vm1 = vcmask (!%p2986_p12), 1043456   ;;  %v3665_v11 = vmov (!%p2986_p12), 0   ;;  %3154 = vmatpush3.bf16.msra.mxu0 (!%p2986_p12), %v3456_v8  ;;  %vm3666_vm2 = vmmov (!%p2986_p12), 0   ;;  %v645_v13 = vld [vmem:[%s4301_s0] sm:$0xff] (!%p2986_p12)  ;;  %v646_v14 = vld [vmem:[%s4301_s0 + $0x8] sm:$0xff] (!%p2986_p12) }
  0x28   : > { %s3837_s15 = scalar_lea.vmem %s4308_s7, %s3063_s29  ;;  %s3842_s1 = scalar_lea.vmem %s4309_s8, %s3066_s22  ;;  %v763_v9 = vunpack.c.0.s8 (!%p2986_p12), %v762_v6  ;;  %v760_v12 = vsel (!%p2986_p12), %vm759_vm0, 1, %v3665_v11  ;;  %3157 = vmatprep.mubr.msk.bf16.mxu0 (!%p2986_p12), %vm3666_vm2, %v3663_v4  ;;  %3155 = vmatprep.subr.bf16.mxu0 (!%p2986_p12), %v3663_v4  ;;  %v666_v16 = vsel (!%p2986_p12), %vm664_vm1, %v3457_v10, 0  ;;  %v647_v18 = vpack.c.bf16 (!%p2986_p12), %v646_v14, %v645_v13  ;;  %v2990_v53 = vld [vmem:[%s4305_s4] ss:$0 sm:$0xff] (!%p2986_p12)  ;;  %v2991_v55 = vld [vmem:[%s4305_s4 + $0x1] ss:$0 sm:$0xff] (!%p2986_p12) }
  0x29   : > { %s3847_s27 = scalar_lea.vmem %s4310_s9, %s3066_s22  ;;  %s3068_s21 = sshll.u32 %s602_s16, 5  ;;  %vm660_vm3 = vcmask (!%p2986_p12), 195584   ;;  %v756_v19 = vand.u32 (!%p2986_p12), 127, %v753_v2  ;;  %v791_v22 = vsub.s32 (!%p2986_p12), 0, %v754_v7  ;;  %vm803_vm8 = vcmask (!%p2986_p12), 64512  }
  0x2a   : > { %s3852_s30 = scalar_lea.vmem %s4311_s10, %s3068_s21  ;;  %s2985_s6 = sshll.u32 %s602_s16, 3  ;;  %v766_v15 = vsub.s32 (!%p2986_p12), %v763_v9, %v754_v7  ;;  %vm711_vm12 = vcmask (!%p2986_p12), 261120  }
  0x2b   : > { %s3857_s14 = scalar_lea.vmem %s4312_s11, %s2985_s6  ;;  %3156 = vmatpush3.bf16.msra.mxu0 (!%p2986_p12), %v666_v16  ;;  %vm757_vm5 = vcmp.gt.s32.totalorder (!%p2986_p12), %v756_v19, %v754_v7 }
  0x2c   : > { %v767_v17 = vrot.slane %v760_v12, %v766_v15 }
  0x2e   : > { %v768_v20 = vcombine.high %v767_v17, %v767_v17  ;;  %v775_v21 = vrot.slane %v767_v17, %v766_v15  ;;  %3158 = vmatmul.mubr.msk.bf16.vlgmr.msra.gmra.mrb[0].mxu0 %vm660_vm3, %v647_v18 }
  0x30   : > { %v782_v23 = vrot.slane %v768_v20, %v766_v15  ;;  %vm783_vm4 = vcmp.ne.s32.totalorder %v775_v21, 0 }
  0x31   : > { %v787_v24 = vsel %vm783_vm4, 1, %v3665_v11 }
  0x32   : > { %vm784_vm6 = vcmp.ne.s32.totalorder %v782_v23, 0  ;;  %v792_v25 = vrot.slane %v787_v24, %v791_v22 }
  0x33   : > { %v788_v26 = vsel %vm784_vm6, 1, %v3665_v11 }
  0x34   : > { %v796_v27 = vrot.slane %v788_v26, %v791_v22  ;;  %vm797_vm7 = vcmp.eq.s32.totalorder %v792_v25, 1 }
  0x35   : > { %vm799_vm9 = vmor %vm757_vm5, %vm797_vm7 }
  0x36   : > { %vm798_vm10 = vcmp.eq.s32.totalorder %v796_v27, 1  ;;  %v801_v28 = vsel %vm799_vm9, -1e+30, %v3663_v4 }
  0x37   : > { %vm800_vm11 = vmor %vm757_vm5, %vm798_vm10  ;;  %804 = vst.msk [vmem:[#allocation2] sm:$0xff] %vm803_vm8, %v801_v28 }
  0x38   : > { %v802_v29 = vsel %vm800_vm11, -1e+30, %v3663_v4 }
  0x39   : > { %805 = vst.msk [vmem:[#allocation2 + $0x8] sm:$0xff] %vm803_vm8, %v802_v29 }
 0x101   : > { %v702_v30 = vpop.f32.mrb[0].mxu0 }
 0x102   : > { %v3159_v31 = vpop.f32.mrb[1].mxu0  ;;  %v712_v32 = vsel %vm711_vm12, %v702_v30, 0.0 }
 0x103   : > { %713 = vadd.xlane.f32.xlu0 %v712_v32  ;;  %v705_v33 = vpop.f32.mrb[2].mxu0 }
 0x104   : > { %v3160_v34 = vpop.f32.mrb[3].mxu0  ;;  %v715_v35 = vsel %vm711_vm12, %v705_v33, 0.0 }
 0x107   : > { %716 = vadd.xlane.f32.xlu0 %v715_v35 }
 0x190   : > { %v714_v36 = vpop.xlane.xlu0 %713 }
 0x191   : > { %v719_v37 = vmul.f32 0.03125, %v714_v36 }
 0x193   : > { %v721_v38 = vsub.f32 %v702_v30, %v719_v37 }
 0x194   : > { %v717_v39 = vpop.xlane.xlu0 %716 }
 0x195   : > { %v720_v40 = vmul.f32 0.03125, %v717_v39  ;;  %v723_v41 = vmul.f32 %v721_v38, %v721_v38 }
 0x197   : > { %v722_v42 = vsub.f32 %v705_v33, %v720_v40  ;;  %v725_v43 = vsel %vm711_vm12, %v723_v41, 0.0 }
 0x198   : > { %726 = vadd.xlane.f32.xlu1 %v725_v43 }
 0x199   : > { %v724_v44 = vmul.f32 %v722_v42, %v722_v42 }
 0x19b   : > { %v728_v45 = vsel %vm711_vm12, %v724_v44, 0.0 }
 0x19c   : > { %729 = vadd.xlane.f32.xlu1 %v728_v45 }
 0x225   : > { %v727_v46 = vpop.xlane.xlu1 %726 }
 0x226   : > { %v731_v47 = vmul.f32 0.03125, %v727_v46 }
 0x228   : > { %v733_v48 = vadd.f32 1e-06, %v731_v47 }
 0x229   : > { %v730_v49 = vpop.xlane.xlu1 %729 }
 0x22a   : > { %3458 = vrsqrt.f32 %v733_v48  ;;  %v732_v50 = vmul.f32 0.03125, %v730_v49 }
 0x22c   : > { %v734_v51 = vadd.f32 1e-06, %v732_v50 }
 0x22e   : > { %3460 = vrsqrt.f32 %v734_v51 }
 0x234   : > { %v3459_v52 = vpop.eup %3458 }
 0x235   : > { %v737_v54 = vmul.f32 %v3459_v52, %v721_v38 }
 0x237   : > { %v743_v56 = vmul.f32 %v2990_v53, %v737_v54 }
 0x238   : > { %v3461_v57 = vpop.eup %3460 }
 0x239   : > { %v749_v58 = vadd.f32 %v2991_v55, %v743_v56  ;;  %v738_v59 = vmul.f32 %v3461_v57, %v722_v42 }
 0x23b   : > { %751 = vst.msk [vmem:[#allocation3] sm:$0xff] %vm711_vm12, %v749_v58  ;;  %v744_v60 = vmul.f32 %v2990_v53, %v738_v59 }
 0x23d   : > { %v750_v61 = vadd.f32 %v2991_v55, %v744_v60 }
 0x23f   : > { %752 = vst.msk [vmem:[#allocation3 + $0x8] sm:$0xff] %vm711_vm12, %v750_v61 }
 0x240 PF: > { %v3479_v62 = vld [vmem:[%s3827_s25] sm:$0xff]   ;;  %v3667_v63 = vmov 0.0   ;;  %v3481_v3 = vld [vmem:[%s3827_s25 + $0x8] sm:$0xff]   ;;  %vm3668_vm13 = vmmov 0   ;;  %vm838_vm14 = vcmask 261120   ;;  %v3483_v8 = vld [vmem:[%s3827_s25 + $0x10] sm:$0xff]  }
 0x241   : > { %3161 = vmatprep.subr.bf16.mxu1 %v3667_v63  ;;  %3177 = vmatprep.subr.bf16.mxu0 %v3667_v63  ;;  %v3480_v2 = vld [vmem:[%s3827_s25 + $0x20] sm:$0xff]   ;;  %v3482_v4 = vld [vmem:[%s3827_s25 + $0x28] sm:$0xff]   ;;  %v3485_v10 = vld [vmem:[%s3827_s25 + $0x18] sm:$0xff]   ;;  %vm1522_vm15 = vcmask 64512   ;;  %vm2017_vm0 = vcmask 1043456   ;;  %vm2005_vm1 = vcmask 60416  }
 0x242   : > { %3162 = vmatpush3.bf16.msra.mxu1 %v3479_v62  ;;  %3165 = vmatprep.mubr.msk.bf16.mxu1 %vm3668_vm13, %v3667_v63  ;;  %v806_v5 = vld [vmem:[#allocation3] sm:$0xff]  ;;  %v3484_v9 = vld [vmem:[%s3832_s24] sm:$0xff]   ;;  %v3486_v11 = vld [vmem:[%s3832_s24 + $0x8] sm:$0xff]   ;;  %vm2409_vm2 = vcmask 130048   ;;  %vm2412_vm3 = vcmask 195584   ;;  %vm2637_vm4 = vcmask 523264  }
 0x243   : > { %3178 = vmatpush3.bf16.msra.mxu0 %v3480_v2  ;;  %3163 = vmatprep.subr.bf16.mxu1 %v3667_v63  ;;  %v3487_v12 = vld [vmem:[%s3827_s25 + $0x30] sm:$0xff]   ;;  %v3491_v13 = vld [vmem:[%s3832_s24 + $0x20] sm:$0xff]   ;;  %v3488_v14 = vld [vmem:[%s3827_s25 + $0x38] sm:$0xff]   ;;  %s3669_s25 = smov 8   ;;  %s4350_s5 = sld [smem:[#allocation22_spill]] }
 0x244   : > { %3179 = vmatprep.subr.bf16.mxu0 %v3667_v63  ;;  %3181 = vmatprep.mubr.msk.bf16.mxu0 %vm3668_vm13, %v3667_v63  ;;  %v3492_v15 = vld [vmem:[%s3832_s24 + $0x28] sm:$0xff]   ;;  %v3489_v16 = vld [vmem:[%s3832_s24 + $0x10] sm:$0xff]   ;;  %v3495_v17 = vld [vmem:[%s3837_s15] sm:$0xff]   ;;  %s2759_s6 = sshll.u32 %s3859_s23, 4  ;;  %s4351_s22 = sand.u32 1, %s3645_s26   ;;  %s4220_s6 = int_to_ptr.vmem [resolvable:$true] %s2759_s6 }
 0x245   : > { %v3490_v18 = vld [vmem:[%s3832_s24 + $0x18] sm:$0xff]   ;;  %v3497_v19 = vld [vmem:[%s3837_s15 + $0x8] sm:$0xff]   ;;  %v3493_v20 = vld [vmem:[%s3832_s24 + $0x30] sm:$0xff]   ;;  %s4224_s17 = scalar_lea.sflag [#allocation6], %s4351_s22  ;;  %s3553_s20 = scalar_lea.vmem %s4220_s6, 512 }
 0x246   : > { %v807_v6 = vld [vmem:[#allocation3 + $0x8] sm:$0xff]  ;;  %3164 = vmatpush3.bf16.msra.mxu1 %v3481_v3  ;;  %v3499_v21 = vld [vmem:[%s3837_s15 + $0x20] sm:$0xff]   ;;  %v3496_v23 = vld [vmem:[%s3837_s15 + $0x10] sm:$0xff]   ;;  %p3554_p13 = scmp.ne.s32.totalorder %s4220_s6, %s3553_s20 }
 0x247   : > { %v3901_v7 = vpack.c.bf16 %v807_v6, %v806_v5  ;;  %3180 = vmatpush3.bf16.msra.mxu0 %v3482_v4  ;;  %3169 = vmatprep.subr.bf16.mxu1 %v3667_v63  ;;  %v3494_v22 = vld [vmem:[%s3832_s24 + $0x38] sm:$0xff]   ;;  %v3500_v25 = vld [vmem:[%s3837_s15 + $0x30] sm:$0xff]   ;;  %v3501_v26 = vld [vmem:[%s3837_s15 + $0x28] sm:$0xff]   ;;  %s3670_s24 = smov 16  }
 0x248   : > { %3193 = vmatprep.subr.bf16.mxu0 %v3667_v63  ;;  %v3498_v24 = vld [vmem:[%s3837_s15 + $0x18] sm:$0xff]   ;;  %p3555_p0 = pnand %p3554_p13, %p3794_p4 }
 0x249   : > { %3166 = vmatmul.mubr.msk.bf16.vlgmr.msra.gmra.mrb[0].mxu1 %vm838_vm14, %v3901_v7  ;;  %v3502_v27 = vld [vmem:[%s3837_s15 + $0x38] sm:$0xff]   ;;  %s3671_s15 = smov 24  }
 0x24a   : > { %3182 = vmatmul.mubr.msk.bf16.vlgmr.msra.gmra.mrb[0].mxu0 %vm838_vm14, %v3901_v7  ;;  %3170 = vmatpush3.bf16.msra.mxu1 %v3483_v8  ;;  %p3556_p1 = pneg %p3555_p0 }
 0x24b   : > { %3194 = vmatpush3.bf16.msra.mxu0 %v3484_v9  ;;  %3171 = vmatprep.subr.bf16.mxu1 %v3667_v63 }
 0x24c   : > { %3195 = vmatprep.subr.bf16.mxu0 %v3667_v63  ;;  %3173 = vmatprep.mubr.msk.bf16.mxu1 %vm3668_vm13, %v3667_v63 }
 0x24d   : > { %3197 = vmatprep.mubr.msk.bf16.mxu0 %vm3668_vm13, %v3667_v63 }
 0x24e   : > { %3172 = vmatpush3.bf16.msra.mxu1 %v3485_v10 }
 0x24f   : > { %3196 = vmatpush3.bf16.msra.mxu0 %v3486_v11  ;;  %3185 = vmatprep.subr.bf16.mxu1 %v3667_v63 }
 0x250   : > { %3209 = vmatprep.subr.bf16.mxu0 %v3667_v63 }
 0x251   : > { %3174 = vmatmul.mubr.msk.bf16.vlgmr.msra.gmra.mrb[4].mxu1 %vm838_vm14, %v3901_v7 }
 0x252   : > { %3198 = vmatmul.mubr.msk.bf16.vlgmr.msra.gmra.mrb[4].mxu0 %vm838_vm14, %v3901_v7  ;;  %3186 = vmatpush3.bf16.msra.mxu1 %v3487_v12 }
 0x253   : > { %3187 = vmatprep.subr.bf16.mxu1 %v3667_v63  ;;  %3189 = vmatprep.mubr.msk.bf16.mxu1 %vm3668_vm13, %v3667_v63 }
 0x254   : > { %3210 = vmatpush3.bf16.msra.mxu0 %v3491_v13  ;;  %3213 = vmatprep.mubr.msk.bf16.mxu0 %vm3668_vm13, %v3667_v63 }
 0x255   : > { %3211 = vmatprep.subr.bf16.mxu0 %v3667_v63 }
 0x256   : > { %3188 = vmatpush3.bf16.msra.mxu1 %v3488_v14 }
 0x257   : > { %3201 = vmatprep.subr.bf16.mxu1 %v3667_v63 }
 0x258   : > { %3212 = vmatpush3.bf16.msra.mxu0 %v3492_v15 }
 0x259   : > { %3190 = vmatmul.mubr.msk.bf16.vlgmr.msra.gmra.mrb[8].mxu1 %vm838_vm14, %v3901_v7  ;;  %3225 = vmatprep.subr.bf16.mxu0 %v3667_v63 }
 0x25a   : > { %3202 = vmatpush3.bf16.msra.mxu1 %v3489_v16  ;;  %3205 = vmatprep.mubr.msk.bf16.mxu1 %vm3668_vm13, %v3667_v63 }
 0x25b   : > { %3203 = vmatprep.subr.bf16.mxu1 %v3667_v63  ;;  %3214 = vmatmul.mubr.msk.bf16.vlgmr.msra.gmra.mrb[8].mxu0 %vm838_vm14, %v3901_v7 }
 0x25c   : > { %3226 = vmatpush3.bf16.msra.mxu0 %v3495_v17  ;;  %3229 = vmatprep.mubr.msk.bf16.mxu0 %vm3668_vm13, %v3667_v63 }
 0x25d   : > { %3227 = vmatprep.subr.bf16.mxu0 %v3667_v63 }
 0x25e   : > { %3204 = vmatpush3.bf16.msra.mxu1 %v3490_v18 }
 0x25f   : > { %3217 = vmatprep.subr.bf16.mxu1 %v3667_v63 }
 0x260   : > { %3228 = vmatpush3.bf16.msra.mxu0 %v3497_v19 }
 0x261   : > { %3206 = vmatmul.mubr.msk.bf16.vlgmr.msra.gmra.mrb[12].mxu1 %vm838_vm14, %v3901_v7  ;;  %3241 = vmatprep.subr.bf16.mxu0 %v3667_v63 }
 0x262   : > { %3218 = vmatpush3.bf16.msra.mxu1 %v3493_v20  ;;  %3221 = vmatprep.mubr.msk.bf16.mxu1 %vm3668_vm13, %v3667_v63 }
 0x263   : > { %3219 = vmatprep.subr.bf16.mxu1 %v3667_v63  ;;  %3230 = vmatmul.mubr.msk.bf16.vlgmr.msra.gmra.mrb[12].mxu0 %vm838_vm14, %v3901_v7 }
 0x264   : > { %3242 = vmatpush3.bf16.msra.mxu0 %v3499_v21  ;;  %3245 = vmatprep.mubr.msk.bf16.mxu0 %vm3668_vm13, %v3667_v63 }
 0x265   : > { %3243 = vmatprep.subr.bf16.mxu0 %v3667_v63 }
 0x266   : > { %3220 = vmatpush3.bf16.msra.mxu1 %v3494_v22 }
 0x267   : > { %3233 = vmatprep.subr.bf16.mxu1 %v3667_v63 }
 0x268   : > { %3244 = vmatpush3.bf16.msra.mxu0 %v3501_v26 }
 0x269   : > { %3222 = vmatmul.mubr.msk.bf16.vlgmr.msra.gmra.mrb[16].mxu1 %vm838_vm14, %v3901_v7  ;;  %3257 = vmatprep.subr.bf16.mxu0 %v3667_v63 }
 0x26a   : > { %3234 = vmatpush3.bf16.msra.mxu1 %v3496_v23  ;;  %3237 = vmatprep.mubr.msk.bf16.mxu1 %vm3668_vm13, %v3667_v63 }
 0x26b   : > { %3235 = vmatprep.subr.bf16.mxu1 %v3667_v63  ;;  %3246 = vmatmul.mubr.msk.bf16.vlgmr.msra.gmra.mrb[16].mxu0 %vm838_vm14, %v3901_v7 }
 0x26c   : > { %3259 = vmatprep.mubr.msk.bf16.mxu0 %vm3668_vm13, %v3667_v63 }
 0x26e   : > { %3236 = vmatpush3.bf16.msra.mxu1 %v3498_v24 }
 0x26f   : > { %3249 = vmatprep.subr.bf16.mxu1 %v3667_v63 }
 0x271   : > { %3238 = vmatmul.mubr.msk.bf16.vlgmr.msra.gmra.mrb[20].mxu1 %vm838_vm14, %v3901_v7 }
 0x272   : > { %3253 = vmatprep.mubr.msk.bf16.mxu1 %vm3668_vm13, %v3667_v63  ;;  %3250 = vmatpush3.bf16.msra.mxu1 %v3500_v25 }
 0x273   : > { %3251 = vmatprep.subr.bf16.mxu1 %v3667_v63 }
 0x276   : > { %3252 = vmatpush3.bf16.msra.mxu1 %v3502_v27 }
 0x277   : > { %3263 = vmatprep.subr.bf16.mxu1 %v3667_v63 }
 0x279   : > { %3254 = vmatmul.mubr.msk.bf16.vlgmr.msra.gmra.mrb[24].mxu1 %vm838_vm14, %v3901_v7 }
 0x27a   : > { %3265 = vmatprep.mubr.msk.bf16.mxu1 %vm3668_vm13, %v3667_v63 }
 0x31c   : > { %v876_v28 = vpop.f32.mrb[0].mxu1 }
 0x31d   : > { %v3167_v29 = vpop.f32.mrb[1].mxu1  ;;  %v3993_v30 = vpop.f32.mrb[0].mxu0  ;;  %v1498_v50 = vpack.c.bf16 %v876_v28, %v876_v28 }
 0x31e   : > { %v879_v31 = vpop.f32.mrb[2].mxu1  ;;  %v3183_v32 = vpop.f32.mrb[1].mxu0  ;;  %v1502_v22 = vpack.c.bf16 %v3993_v30, %v3993_v30 }
 0x31f   : > { %v3168_v33 = vpop.f32.mrb[3].mxu1  ;;  %v3995_v34 = vpop.f32.mrb[2].mxu0  ;;  %v1499_v55 = vpack.c.bf16 %v879_v31, %v879_v31 }
 0x320   : > { %v3184_v35 = vpop.f32.mrb[3].mxu0  ;;  %v1503_v26 = vpack.c.bf16 %v3995_v34, %v3995_v34 }
 0x324   : > { %v929_v36 = vpop.f32.mrb[4].mxu1 }
 0x325   : > { %v1104_v37 = vpop.f32.mrb[4].mxu0  ;;  %v3175_v38 = vpop.f32.mrb[5].mxu1  ;;  %v1500_v12 = vpack.c.bf16 %v929_v36, %v929_v36 }
 0x326   : > { %v1506_v39 = vpack.c.bf16 %v1104_v37, %v1104_v37  ;;  %v3199_v40 = vpop.f32.mrb[5].mxu0  ;;  %v932_v41 = vpop.f32.mrb[6].mxu1 }
 0x327   : > { %v1107_v42 = vpop.f32.mrb[6].mxu0  ;;  %v3176_v43 = vpop.f32.mrb[7].mxu1  ;;  %v1501_v16 = vpack.c.bf16 %v932_v41, %v932_v41 }
 0x328   : > { %v1527_v44 = vsel %vm1522_vm15, %v1506_v39, 0  ;;  %v1507_v45 = vpack.c.bf16 %v1107_v42, %v1107_v42  ;;  %v3200_v46 = vpop.f32.mrb[7].mxu0 }
 0x329   : > { %3258 = vmatpush3.bf16.xpose.msra.mxu0 %v1527_v44  ;;  %v1899_v44 = vld [vmem:[#allocation2] sm:$0xff] }
 0x32a   : > { %v1573_v47 = vsel %vm1522_vm15, %v1507_v45, 0  ;;  %3269 = vmatprep.subr.bf16.mxu0 %v3667_v63 }
 0x32b   : > { %3264 = vmatpush3.bf16.xpose.msra.mxu1 %v1573_v47 }
 0x32c   : > { %v4000_v48 = vpop.f32.mrb[8].mxu1  ;;  %3275 = vmatprep.subr.bf16.mxu1 %v3667_v63 }
 0x32d   : > { %v3191_v49 = vpop.f32.mrb[9].mxu1  ;;  %v1504_v31 = vpack.c.bf16 %v4000_v48, %v4000_v48 }
 0x32e   : > { %v4003_v51 = vpop.f32.mrb[10].mxu1  ;;  %v1210_v52 = vpop.f32.mrb[8].mxu0  ;;  %v1900_v49 = vld [vmem:[#allocation2 + $0x8] sm:$0xff] }
 0x32f   : > { %v3192_v53 = vpop.f32.mrb[11].mxu1  ;;  %v3215_v54 = vpop.f32.mrb[9].mxu0  ;;  %v1510_v8 = vpack.c.bf16 %v1210_v52, %v1210_v52  ;;  %v1505_v33 = vpack.c.bf16 %v4003_v51, %v4003_v51 }
 0x330   : > { %3260 = vmatmul.mubr.msk.bf16.vlgmr.msra.gmra.mrb[20].mxu0 %vm1522_vm15, %v1498_v50  ;;  %v1213_v56 = vpop.f32.mrb[10].mxu0 }
 0x331   : > { %v3216_v57 = vpop.f32.mrb[11].mxu0  ;;  %3271 = vmatprep.mubr.msk.bf16.mxu0 %vm3668_vm13, %v3667_v63  ;;  %v1511_v10 = vpack.c.bf16 %v1213_v56, %v1213_v56  ;;  %v1711_v13 = vsel %vm1522_vm15, %v1510_v8, 0 }
 0x332   : > { %3266 = vmatmul.mubr.msk.bf16.vlgmr.msra.gmra.mrb[28].mxu1 %vm1522_vm15, %v1499_v55 }
 0x333   : > { %3277 = vmatprep.mubr.msk.bf16.mxu1 %vm3668_vm13, %v3667_v63  ;;  %v1757_v17 = vsel %vm1522_vm15, %v1511_v10, 0 }
 0x334   : > { %v1157_v58 = vpop.f32.mrb[12].mxu1 }
 0x335   : > { %v1508_v59 = vpack.c.bf16 %v1157_v58, %v1157_v58  ;;  %v3207_v60 = vpop.f32.mrb[13].mxu1 }
 0x336   : > { %v1160_v61 = vpop.f32.mrb[14].mxu1  ;;  %v1332_v62 = vpop.f32.mrb[12].mxu0 }
 0x337   : > { %v1619_v2 = vsel %vm1522_vm15, %v1508_v59, 0  ;;  %v1509_v3 = vpack.c.bf16 %v1160_v61, %v1160_v61  ;;  %v3208_v4 = vpop.f32.mrb[15].mxu1  ;;  %v3231_v5 = vpop.f32.mrb[13].mxu0  ;;  %v1514_v29 = vpack.c.bf16 %v1332_v62, %v1332_v62 }
 0x338   : > { %3270 = vmatpush3.bf16.xpose.msra.mxu0 %v1619_v2  ;;  %v1335_v6 = vpop.f32.mrb[14].mxu0 }
 0x339   : > { %v1665_v7 = vsel %vm1522_vm15, %v1509_v3, 0  ;;  %3281 = vmatprep.subr.bf16.mxu0 %v3667_v63  ;;  %v3232_v9 = vpop.f32.mrb[15].mxu0  ;;  %v1515_v30 = vpack.c.bf16 %v1335_v6, %v1335_v6  ;;  %v2019_v32 = vsel %vm2017_vm0, %v1514_v29, 0 }
 0x33a   : > { %3276 = vmatpush3.bf16.xpose.msra.mxu1 %v1665_v7 }
 0x33b   : > { %3287 = vmatprep.subr.bf16.mxu1 %v3667_v63  ;;  %v2065_v34 = vsel %vm2017_vm0, %v1515_v30, 0 }
 0x33c   : > { %v1263_v11 = vpop.f32.mrb[16].mxu1 }
 0x33d   : > { %v3223_v14 = vpop.f32.mrb[17].mxu1  ;;  %v1512_v19 = vpack.c.bf16 %v1263_v11, %v1263_v11 }
 0x33e   : > { %v1266_v15 = vpop.f32.mrb[18].mxu1  ;;  %v4057_v35 = vpop.f32.mrb[16].mxu0 }
 0x33f   : > { %3272 = vmatmul.mubr.msk.bf16.vlgmr.msra.gmra.mrb[24].mxu0 %vm1522_vm15, %v1500_v12  ;;  %v3224_v18 = vpop.f32.mrb[19].mxu1  ;;  %v1513_v20 = vpack.c.bf16 %v1266_v15, %v1266_v15  ;;  %v1803_v23 = vsel %vm1522_vm15, %v1512_v19, 0  ;;  %v3247_v36 = vpop.f32.mrb[17].mxu0 }
 0x340   : > { %3282 = vmatpush3.bf16.xpose.msra.mxu0 %v1711_v13  ;;  %3283 = vmatprep.mubr.msk.bf16.mxu0 %vm3668_vm13, %v3667_v63  ;;  %v4059_v37 = vpop.f32.mrb[18].mxu0 }
 0x341   : > { %3278 = vmatmul.mubr.msk.bf16.vlgmr.msra.gmra.mrb[32].mxu1 %vm1522_vm15, %v1501_v16  ;;  %3293 = vmatprep.subr.bf16.mxu0 %v3667_v63  ;;  %v1849_v27 = vsel %vm1522_vm15, %v1513_v20, 0  ;;  %v3248_v39 = vpop.f32.mrb[19].mxu0 }
 0x342   : > { %3288 = vmatpush3.bf16.xpose.msra.mxu1 %v1757_v17  ;;  %3289 = vmatprep.mubr.msk.bf16.mxu1 %vm3668_vm13, %v3667_v63 }
 0x343   : > { %3299 = vmatprep.subr.bf16.mxu1 %v3667_v63 }
 0x344   : > { %v4025_v21 = vpop.f32.mrb[20].mxu1 }
 0x345   : > { %v3239_v24 = vpop.f32.mrb[21].mxu1 }
 0x346   : > { %v4030_v25 = vpop.f32.mrb[22].mxu1 }
 0x347   : > { %3284 = vmatmul.mubr.msk.bf16.vlgmr.msra.gmra.mrb[28].mxu0 %vm1522_vm15, %v1502_v22  ;;  %v3240_v28 = vpop.f32.mrb[23].mxu1 }
 0x348   : > { %3294 = vmatpush3.bf16.xpose.msra.mxu0 %v1803_v23  ;;  %3295 = vmatprep.mubr.msk.bf16.mxu0 %vm3668_vm13, %v3667_v63 }
 0x349   : > { %3290 = vmatmul.mubr.msk.bf16.vlgmr.msra.gmra.mrb[36].mxu1 %vm1522_vm15, %v1503_v26  ;;  %3305 = vmatprep.subr.bf16.mxu0 %v3667_v63 }
 0x34a   : > { %3300 = vmatpush3.bf16.xpose.msra.mxu1 %v1849_v27  ;;  %3301 = vmatprep.mubr.msk.bf16.mxu1 %vm3668_vm13, %v3667_v63 }
 0x34b   : > { %3311 = vmatprep.subr.bf16.mxu1 %v3667_v63 }
 0x34c   : > { %v4061_v38 = vpop.f32.mrb[24].mxu1 }
 0x34d   : > { %v3255_v40 = vpop.f32.mrb[25].mxu1 }
 0x34e   : > { %v4063_v41 = vpop.f32.mrb[26].mxu1 }
 0x34f   : > { %3296 = vmatmul.mubr.msk.bf16.vlgmr.msra.gmra.mrb[32].mxu0 %vm1522_vm15, %v1504_v31  ;;  %v3256_v42 = vpop.f32.mrb[27].mxu1 }
 0x350   : > { %3306 = vmatpush3.bf16.msra.mxu0 %v2019_v32  ;;  %3307 = vmatprep.mubr.msk.bf16.mxu0 %vm3668_vm13, %v3667_v63 }
 0x351   : > { %3302 = vmatmul.mubr.msk.bf16.vlgmr.msra.gmra.mrb[40].mxu1 %vm1522_vm15, %v1505_v33  ;;  %3317 = vmatprep.subr.bf16.mxu0 %v3667_v63 }
 0x352   : > { %3312 = vmatpush3.bf16.msra.mxu1 %v2065_v34  ;;  %3313 = vmatprep.mubr.msk.bf16.mxu1 %vm3668_vm13, %v3667_v63 }
 0x353   : > { %3323 = vmatprep.subr.bf16.mxu1 %v3667_v63 }
 0x403   : > { %v1563_v43 = vpop.f32.mrb[20].mxu0 }
 0x404   : > { %v1891_v45 = vmul.f32 0.35355338, %v1563_v43  ;;  %v3261_v46 = vpop.f32.mrb[21].mxu0 }
 0x405   : > { %v1566_v47 = vpop.f32.mrb[22].mxu0  ;;  %v1609_v48 = vpop.f32.mrb[28].mxu1 }
 0x406   : > { %v1892_v50 = vmul.f32 0.35355338, %v1609_v48  ;;  %v3262_v51 = vpop.f32.mrb[23].mxu0  ;;  %v3267_v52 = vpop.f32.mrb[29].mxu1  ;;  %v1901_v53 = vadd.f32 %v1899_v44, %v1891_v45 }
 0x407   : > { %v1612_v54 = vpop.f32.mrb[30].mxu1 }
 0x408   : > { %v3268_v55 = vpop.f32.mrb[31].mxu1  ;;  %v1909_v56 = vsel %vm1522_vm15, %v1901_v53, -inf  ;;  %v1902_v57 = vadd.f32 %v1900_v49, %v1892_v50 }
 0x409   : > { %1910 = vmax.xlane.f32.xlu0 %v1909_v56 }
 0x40a   : > { %v1912_v58 = vsel %vm1522_vm15, %v1902_v57, -inf }
 0x40d   : > { %1913 = vmax.xlane.f32.xlu0 %v1912_v58 }
 0x412   : > { %v1655_v59 = vpop.f32.mrb[24].mxu0 }
 0x413   : > { %v1893_v60 = vmul.f32 0.35355338, %v1655_v59  ;;  %v3273_v61 = vpop.f32.mrb[25].mxu0 }
 0x414   : > { %v1658_v62 = vpop.f32.mrb[26].mxu0  ;;  %v1701_v2 = vpop.f32.mrb[32].mxu1 }
 0x415   : > { %v1894_v3 = vmul.f32 0.35355338, %v1701_v2  ;;  %v3274_v4 = vpop.f32.mrb[27].mxu0  ;;  %v3279_v5 = vpop.f32.mrb[33].mxu1  ;;  %v1903_v6 = vadd.f32 %v1899_v44, %v1893_v60 }
 0x416   : > { %v1704_v7 = vpop.f32.mrb[34].mxu1 }
 0x417   : > { %v3280_v8 = vpop.f32.mrb[35].mxu1  ;;  %v1915_v9 = vsel %vm1522_vm15, %v1903_v6, -inf  ;;  %v1904_v10 = vadd.f32 %v1900_v49, %v1894_v3 }
 0x418   : > { %1916 = vmax.xlane.f32.xlu1 %v1915_v9 }
 0x419   : > { %v1918_v14 = vsel %vm1522_vm15, %v1904_v10, -inf }
 0x41a   : > { %v1747_v11 = vpop.f32.mrb[28].mxu0 }
 0x41b   : > { %v1895_v12 = vmul.f32 0.35355338, %v1747_v11  ;;  %v3285_v13 = vpop.f32.mrb[29].mxu0 }
 0x41c   : > { %v1750_v15 = vpop.f32.mrb[30].mxu0  ;;  %1919 = vmax.xlane.f32.xlu1 %v1918_v14  ;;  %v1793_v16 = vpop.f32.mrb[36].mxu1 }
 0x41d   : > { %v1896_v17 = vmul.f32 0.35355338, %v1793_v16  ;;  %v3286_v18 = vpop.f32.mrb[31].mxu0  ;;  %v3291_v19 = vpop.f32.mrb[37].mxu1  ;;  %v1905_v20 = vadd.f32 %v1899_v44, %v1895_v12 }
 0x41e   : > { %v1796_v22 = vpop.f32.mrb[38].mxu1 }
 0x41f   : > { %v3292_v23 = vpop.f32.mrb[39].mxu1  ;;  %v1921_v24 = vsel %vm1522_vm15, %v1905_v20, -inf  ;;  %v1906_v26 = vadd.f32 %v1900_v49, %v1896_v17 }
 0x420   : > { %1922 = vmax.xlane.f32.xlu0 %v1921_v24 }
 0x421   : > { %v1924_v27 = vsel %vm1522_vm15, %v1906_v26, -inf }
 0x422   : > { %v1839_v28 = vpop.f32.mrb[32].mxu0  ;;  %1925 = vmax.xlane.f32.xlu1 %v1924_v27 }
 0x423   : > { %v1897_v29 = vmul.f32 0.35355338, %v1839_v28  ;;  %v3297_v30 = vpop.f32.mrb[33].mxu0 }
 0x424   : > { %v1842_v31 = vpop.f32.mrb[34].mxu0  ;;  %v1885_v32 = vpop.f32.mrb[40].mxu1  ;;  %v1516_v30 = vpack.c.bf16 %v4025_v21, %v4025_v21 }
 0x425   : > { %v1898_v33 = vmul.f32 0.35355338, %v1885_v32  ;;  %v3298_v34 = vpop.f32.mrb[35].mxu0  ;;  %v3303_v36 = vpop.f32.mrb[41].mxu1  ;;  %v1907_v39 = vadd.f32 %v1899_v44, %v1897_v29 }
 0x426   : > { %v1888_v40 = vpop.f32.mrb[42].mxu1  ;;  %v2111_v36 = vsel %vm2017_vm0, %v1516_v30, 0 }
 0x427   : > { %v3304_v42 = vpop.f32.mrb[43].mxu1  ;;  %v1927_v43 = vsel %vm1522_vm15, %v1907_v39, -inf  ;;  %v1908_v45 = vadd.f32 %v1900_v49, %v1898_v33 }
 0x428   : > { %1928 = vmax.xlane.f32.xlu0 %v1927_v43 }
 0x429   : > { %v1930_v46 = vsel %vm1522_vm15, %v1908_v45, -inf }
 0x42a   : > { %1931 = vmax.xlane.f32.xlu1 %v1930_v46 }
 0x496   : > { %v1911_v47 = vpop.xlane.xlu0 %1910 }
 0x497   : > { %v1933_v48 = vsub.f32 %v1901_v53, %v1911_v47  ;;  %v1518_v47 = vpack.c.bf16 %v4057_v35, %v4057_v35 }
 0x499   : > { %v1941_v50 = vmul.f32 1.442695, %v1933_v48 }
 0x49a   : > { %v1914_v51 = vpop.xlane.xlu0 %1913 }
 0x49b   : > { %3511 = vpow2.f32 %v1941_v50  ;;  %v1934_v52 = vsub.f32 %v1902_v57, %v1914_v51 }
 0x49d   : > { %v1943_v54 = vmul.f32 1.442695, %v1934_v52  ;;  %v2203_v52 = vsel %vm2017_vm0, %v1518_v47, 0 }
 0x49f   : > { %3513 = vpow2.f32 %v1943_v54  ;;  %v1519_v54 = vpack.c.bf16 %v4059_v37, %v4059_v37 }
 0x4a1   : > { %v2249_v37 = vsel %vm2017_vm0, %v1519_v54, 0 }
 0x4a5   : > { %v3512_v55 = vpop.eup %3511  ;;  %v1917_v56 = vpop.xlane.xlu1 %1916 }
 0x4a6   : > { %v1935_v44 = vsub.f32 %v1903_v6, %v1917_v56  ;;  %v1957_v58 = vsel %vm1522_vm15, %v3512_v55, 0.0 }
 0x4a7   : > { %1958 = vadd.xlane.f32.xlu0 %v1957_v58 }
 0x4a8   : > { %v1945_v59 = vmul.f32 1.442695, %v1935_v44 }
 0x4a9   : > { %v3514_v49 = vpop.eup %3513  ;;  %v1920_v60 = vpop.xlane.xlu1 %1919 }
 0x4aa   : > { %3515 = vpow2.f32 %v1945_v59  ;;  %v1936_v61 = vsub.f32 %v1904_v10, %v1920_v60  ;;  %v1960_v62 = vsel %vm1522_vm15, %v3514_v49, 0.0  ;;  %v1520_v59 = vpack.c.bf16 %v4061_v38, %v4061_v38 }
 0x4ab   : > { %1961 = vadd.xlane.f32.xlu1 %v1960_v62  ;;  %v1521_v38 = vpack.c.bf16 %v4063_v41, %v4063_v41 }
 0x4ac   : > { %v1947_v53 = vmul.f32 1.442695, %v1936_v61 }
 0x4ad   : > { %v1923_v2 = vpop.xlane.xlu0 %1922 }
 0x4ae   : > { %3517 = vpow2.f32 %v1947_v53  ;;  %v1937_v57 = vsub.f32 %v1905_v20, %v1923_v2  ;;  %v2295_v53 = vsel %vm2017_vm0, %v1520_v59, 0 }
 0x4af   : > { %v1926_v3 = vpop.xlane.xlu1 %1925 }
 0x4b0   : > { %v1949_v4 = vmul.f32 1.442695, %v1937_v57  ;;  %v1938_v5 = vsub.f32 %v1906_v26, %v1926_v3  ;;  %v2341_v3 = vsel %vm2017_vm0, %v1521_v38, 0 }
 0x4b2   : > { %3519 = vpow2.f32 %v1949_v4  ;;  %v1951_v6 = vmul.f32 1.442695, %v1938_v5 }
 0x4b4   : > { %v3516_v7 = vpop.eup %3515  ;;  %3521 = vpow2.f32 %v1951_v6 }
 0x4b5   : > { %v1929_v8 = vpop.xlane.xlu0 %1928  ;;  %v1963_v9 = vsel %vm1522_vm15, %v3516_v7, 0.0 }
 0x4b6   : > { %v1939_v11 = vsub.f32 %v1907_v39, %v1929_v8  ;;  %1964 = vadd.xlane.f32.xlu0 %v1963_v9  ;;  %v1517_v39 = vpack.c.bf16 %v4030_v25, %v4030_v25 }
 0x4b7   : > { %v1932_v10 = vpop.xlane.xlu1 %1931 }
 0x4b8   : > { %v3518_v12 = vpop.eup %3517  ;;  %v1953_v13 = vmul.f32 1.442695, %v1939_v11  ;;  %v1940_v14 = vsub.f32 %v1908_v45, %v1932_v10  ;;  %v2157_v43 = vsel %vm2017_vm0, %v1517_v39, 0 }
 0x4b9   : > { %v1966_v15 = vsel %vm1522_vm15, %v3518_v12, 0.0 }
 0x4ba   : > { %3523 = vpow2.f32 %v1953_v13  ;;  %v1955_v16 = vmul.f32 1.442695, %v1940_v14  ;;  %1967 = vadd.xlane.f32.xlu1 %v1966_v15 }
 0x4bc   : > { %v4077_v17 = vpop.eup %3519  ;;  %3525 = vpow2.f32 %v1955_v16 }
 0x4bd   : > { %v1969_v18 = vsel %vm1522_vm15, %v4077_v17, 0.0 }
 0x4be   : > { %v4081_v19 = vpop.eup %3521  ;;  %1970 = vadd.xlane.f32.xlu0 %v1969_v18 }
 0x4bf   : > { %v1972_v20 = vsel %vm1522_vm15, %v4081_v19, 0.0 }
 0x4c0   : > { %1973 = vadd.xlane.f32.xlu1 %v1972_v20 }
 0x4c4   : > { %v4085_v22 = vpop.eup %3523 }
 0x4c5   : > { %v1975_v23 = vsel %vm1522_vm15, %v4085_v22, 0.0 }
 0x4c6   : > { %v4089_v24 = vpop.eup %3525  ;;  %1976 = vadd.xlane.f32.xlu0 %v1975_v23 }
 0x4c7   : > { %v1978_v26 = vsel %vm1522_vm15, %v4089_v24, 0.0 }
 0x4c8   : > { %1979 = vadd.xlane.f32.xlu1 %v1978_v26 }
 0x534   : > { %v1959_v27 = vpop.xlane.xlu0 %1958 }
 0x535   : > { %3527 = vrcp.f32 %v1959_v27 }
 0x538   : > { %v1962_v28 = vpop.xlane.xlu1 %1961 }
 0x539   : > { %3529 = vrcp.f32 %v1962_v28 }
 0x53f   : > { %v3528_v29 = vpop.eup %3527 }
 0x540   : > { %v1989_v31 = vmul.f32 %v3528_v29, %v3512_v55 }
 0x542   : > { %v1997_v32 = vpack.c.bf16 %v1989_v31, %v1989_v31 }
 0x543   : > { %v3530_v33 = vpop.eup %3529  ;;  %v1965_v34 = vpop.xlane.xlu0 %1964 }
 0x544   : > { %v1990_v40 = vmul.f32 %v3530_v33, %v3514_v49  ;;  %2006 = vst.msk [vmem:[%s3859_s23] sm:$0xf] %vm2005_vm1, %v1997_v32  ;;  %3308 = vmatmul.mubr.msk.bf16.vlgmr.msra.gmra.mrb[36].mxu0 %vm1522_vm15, %v1997_v32  ;;  %3531 = vrcp.f32 %v1965_v34  ;;  %v3504_v33 = vld [vmem:[%s3842_s1 + $0x8] sm:$0xff]  }
 0x545   : > { %3318 = vmatpush3.bf16.msra.mxu0 %v2111_v36  ;;  %3319 = vmatprep.mubr.msk.bf16.mxu0 %vm3668_vm13, %v3667_v63 }
 0x546   : > { %v1998_v21 = vpack.c.bf16 %v1990_v40, %v1990_v40  ;;  %3329 = vmatprep.subr.bf16.mxu0 %v3667_v63 }
 0x547   : > { %v1968_v42 = vpop.xlane.xlu1 %1967 }
 0x548   : > { %2007 = vst.msk [vmem:[%s3859_s23 + $0x4] sm:$0xf] %vm2005_vm1, %v1998_v21  ;;  %3314 = vmatmul.mubr.msk.bf16.vlgmr.msra.gmra.mrb[44].mxu1 %vm1522_vm15, %v1998_v21  ;;  %3533 = vrcp.f32 %v1968_v42 }
 0x549   : > { %3324 = vmatpush3.bf16.msra.mxu1 %v2157_v43  ;;  %3325 = vmatprep.mubr.msk.bf16.mxu1 %vm3668_vm13, %v3667_v63 }
 0x54a   : > { %3335 = vmatprep.subr.bf16.mxu1 %v3667_v63 }
 0x54b   : > { %v1971_v25 = vpop.xlane.xlu0 %1970 }
 0x54c   : > { %3535 = vrcp.f32 %v1971_v25 }
 0x54d   : > { %v1974_v45 = vpop.xlane.xlu1 %1973 }
 0x54e   : > { %v3532_v46 = vpop.eup %3531  ;;  %3537 = vrcp.f32 %v1974_v45 }
 0x54f   : > { %v1991_v48 = vmul.f32 %v3532_v46, %v3516_v7 }
 0x551   : > { %v1999_v50 = vpack.c.bf16 %v1991_v48, %v1991_v48 }
 0x552   : > { %v3534_v51 = vpop.eup %3533 }
 0x553   : > { %v1992_v55 = vmul.f32 %v3534_v51, %v3518_v12  ;;  %2008 = vst.msk [vmem:[%s3859_s23 + $0x8] sm:$0xf] %vm2005_vm1, %v1999_v50  ;;  %3320 = vmatmul.mubr.msk.bf16.vlgmr.msra.gmra.mrb[40].mxu0 %vm1522_vm15, %v1999_v50  ;;  %v1977_v56 = vpop.xlane.xlu0 %1976 }
 0x554   : > { %3330 = vmatpush3.bf16.msra.mxu0 %v2203_v52  ;;  %3539 = vrcp.f32 %v1977_v56  ;;  %3331 = vmatprep.mubr.msk.bf16.mxu0 %vm3668_vm13, %v3667_v63 }
 0x555   : > { %v1980_v35 = vpop.xlane.xlu1 %1979  ;;  %v2000_v44 = vpack.c.bf16 %v1992_v55, %v1992_v55  ;;  %3341 = vmatprep.subr.bf16.mxu0 %v3667_v63 }
 0x556   : > { %v3536_v58 = vpop.eup %3535  ;;  %3541 = vrcp.f32 %v1980_v35 }
 0x557   : > { %v1993_v49 = vmul.f32 %v3536_v58, %v4077_v17  ;;  %2009 = vst.msk [vmem:[%s3859_s23 + $0xc] sm:$0xf] %vm2005_vm1, %v2000_v44  ;;  %3326 = vmatmul.mubr.msk.bf16.vlgmr.msra.gmra.mrb[48].mxu1 %vm1522_vm15, %v2000_v44 }
 0x558   : > { %v3538_v60 = vpop.eup %3537  ;;  %3336 = vmatpush3.bf16.msra.mxu1 %v2249_v37  ;;  %3337 = vmatprep.mubr.msk.bf16.mxu1 %vm3668_vm13, %v3667_v63 }
 0x559   : > { %v1994_v61 = vmul.f32 %v3538_v60, %v4081_v19  ;;  %v2001_v62 = vpack.c.bf16 %v1993_v49, %v1993_v49  ;;  %3347 = vmatprep.subr.bf16.mxu1 %v3667_v63 }
 0x55b   : > { %2010 = vst.msk [vmem:[%s3859_s23 + $0x10] sm:$0xf] %vm2005_vm1, %v2001_v62  ;;  %3332 = vmatmul.mubr.msk.bf16.vlgmr.msra.gmra.mrb[44].mxu0 %vm1522_vm15, %v2001_v62  ;;  %v2002_v2 = vpack.c.bf16 %v1994_v61, %v1994_v61 }
 0x55c   : > { %3342 = vmatpush3.bf16.msra.mxu0 %v2295_v53  ;;  %3343 = vmatprep.mubr.msk.bf16.mxu0 %vm3668_vm13, %v3667_v63 }
 0x55d   : > { %2011 = vst.msk [vmem:[%s3859_s23 + $0x14] sm:$0xf] %vm2005_vm1, %v2002_v2  ;;  %3353 = vmatprep.subr.bf16.mxu0 %v3667_v63 }
 0x55e   : > { %v3540_v57 = vpop.eup %3539 }
 0x55f   : > { %v1995_v41 = vmul.f32 %v3540_v57, %v4085_v22  ;;  %3338 = vmatmul.mubr.msk.bf16.vlgmr.msra.gmra.mrb[52].mxu1 %vm1522_vm15, %v2002_v2  ;;  %v3503_v22 = vld [vmem:[%s3842_s1] sm:$0xff]   ;;  %v2420_v2 = vlaneseq }
 0x560   : > { %v3542_v4 = vpop.eup %3541  ;;  %3348 = vmatpush3.bf16.msra.mxu1 %v2341_v3  ;;  %3349 = vmatprep.mubr.msk.bf16.mxu1 %vm3668_vm13, %v3667_v63 }
 0x561   : > { %v1996_v5 = vmul.f32 %v3542_v4, %v4089_v24  ;;  %v2003_v6 = vpack.c.bf16 %v1995_v41, %v1995_v41  ;;  %3361 = vmatprep.subr.bf16.mxu1 %v3667_v63  ;;  %v4171_v57 = vshrl.u32 %v2420_v2, 7  ;;  %v4175_v41 = vld [vmem:[%s3857_s14] sm:$0xff] }
 0x563   : > { %2012 = vst.msk [vmem:[%s3859_s23 + $0x18] sm:$0xf] %vm2005_vm1, %v2003_v6  ;;  %3344 = vmatmul.mubr.msk.bf16.vlgmr.msra.gmra.mrb[48].mxu0 %vm1522_vm15, %v2003_v6  ;;  %v2004_v7 = vpack.c.bf16 %v1996_v5, %v1996_v5  ;;  %v2422_v3 = vsub.s32 0, %v4171_v57 }
 0x564   : > { %3357 = vmatprep.mubr.msk.bf16.mxu0 %vm3668_vm13, %v3667_v63  ;;  %3354 = vmatpush3.bf16.msra.mxu0 %v3503_v22 }
 0x565   : > { %2013 = vst.msk [vmem:[%s3859_s23 + $0x1c] sm:$0xf] %vm2005_vm1, %v2004_v7  ;;  %3355 = vmatprep.subr.bf16.mxu0 %v3667_v63  ;;  %v2423_v4 = vrot.slane %v4175_v41, %v2422_v3 }
 0x567   : > { %3350 = vmatmul.mubr.msk.bf16.vlgmr.msra.gmra.mrb[56].mxu1 %vm1522_vm15, %v2004_v7 }
 0x568   : > { %3365 = vmatprep.mubr.msk.bf16.mxu1 %vm3668_vm13, %v3667_v63  ;;  %3356 = vmatpush3.bf16.msra.mxu0 %v3504_v33 }
 0x569   : > { %3369 = vmatprep.subr.bf16.mxu0 %v3667_v63 }
 0x617   : > { %v2055_v8 = vpop.f32.mrb[36].mxu0 }
 0x618   : > { %v3309_v9 = vpop.f32.mrb[37].mxu0 }
 0x619   : > { %v2058_v11 = vpop.f32.mrb[38].mxu0 }
 0x61a   : > { %v3310_v10 = vpop.f32.mrb[39].mxu0 }
 0x61b   : > { %v2101_v12 = vpop.f32.mrb[44].mxu1  ;;  %v3551_v10 = vld [vmem:[#allocation3] sm:$0xff] }
 0x61c   : > { %v3315_v13 = vpop.f32.mrb[45].mxu1 }
 0x61d   : > { %v2104_v14 = vpop.f32.mrb[46].mxu1 }
 0x61e   : > { %v3316_v15 = vpop.f32.mrb[47].mxu1  ;;  %v3552_v14 = vld [vmem:[#allocation3 + $0x8] sm:$0xff] }
 0x626   : > { %v2147_v16 = vpop.f32.mrb[40].mxu0 }
 0x627   : > { %v3321_v17 = vpop.f32.mrb[41].mxu0 }
 0x628   : > { %v2150_v18 = vpop.f32.mrb[42].mxu0  ;;  %v3672_v17 = vmov 0  }
 0x629   : > { %v3322_v19 = vpop.f32.mrb[43].mxu0  ;;  %3477 = vset.pattern.permute.xlu1 %v3672_v17  ;;  %3478 = vset.pattern.permute.xlu0 %v3672_v17 }
 0x62a   : > { %v2193_v20 = vpop.f32.mrb[48].mxu1 }
 0x62b   : > { %v3462_v23 = vpack.i.bf16 %v2193_v20, %v2147_v16  ;;  %v3327_v24 = vpop.f32.mrb[49].mxu1 }
 0x62c   : > { %v2196_v26 = vpop.f32.mrb[50].mxu1 }
 0x62d   : > { %3463 = vrot.lane.b32.xlu0 %v3462_v23, %s3669_s25  ;;  %v3328_v27 = vpop.f32.mrb[51].mxu1 }
 0x62e   : > { %v2239_v28 = vpop.f32.mrb[44].mxu0 }
 0x62f   : > { %v3333_v29 = vpop.f32.mrb[45].mxu0 }
 0x630   : > { %v2242_v30 = vpop.f32.mrb[46].mxu0 }
 0x631   : > { %v3334_v31 = vpop.f32.mrb[47].mxu0  ;;  %v3506_v30 = vld [vmem:[%s3847_s27 + $0x8] sm:$0xff]  }
 0x632   : > { %v2285_v32 = vpop.f32.mrb[52].mxu1  ;;  %v3507_v31 = vld [vmem:[%s3852_s30] sm:$0xff]  }
 0x633   : > { %v3467_v34 = vpack.i.bf16 %v2285_v32, %v2239_v28  ;;  %v3339_v36 = vpop.f32.mrb[53].mxu1  ;;  %v3508_v32 = vld [vmem:[%s3852_s30 + $0x8] sm:$0xff]  }
 0x634   : > { %v2288_v39 = vpop.f32.mrb[54].mxu1 }
 0x635   : > { %3468 = vrot.lane.b32.xlu1 %v3467_v34, %s3670_s24  ;;  %v3340_v40 = vpop.f32.mrb[55].mxu1 }
 0x636   : > { %v2331_v21 = vpop.f32.mrb[48].mxu0 }
 0x637   : > { %v3345_v42 = vpop.f32.mrb[49].mxu0 }
 0x638   : > { %v2334_v43 = vpop.f32.mrb[50].mxu0 }
 0x639   : > { %v3346_v25 = vpop.f32.mrb[51].mxu0  ;;  %v2517_v43 = vsub.s32 2, %v4171_v57 }
 0x63a   : > { %v2377_v45 = vpop.f32.mrb[56].mxu1 }
 0x63b   : > { %v3472_v46 = vpack.i.bf16 %v2377_v45, %v2331_v21  ;;  %v3351_v47 = vpop.f32.mrb[57].mxu1  ;;  %v2511_v21 = vsub.s32 1, %v4171_v57 }
 0x63c   : > { %v2380_v48 = vpop.f32.mrb[58].mxu1 }
 0x63d   : > { %3473 = vrot.lane.b32.xlu1 %v3472_v46, %s3671_s15  ;;  %v3352_v50 = vpop.f32.mrb[59].mxu1  ;;  %v2512_v42 = vrot.slane %v4175_v41, %v2511_v21  ;;  %v2518_v46 = vrot.slane %v4175_v41, %v2517_v43 }
 0x69f   : > { %v3464_v51 = vpop.permute.xlu0 %3463 }
 0x6a0   : > { %v3466_v54 = vunpack.i.h.bf16 %v3464_v51  ;;  %v3465_v55 = vunpack.i.l.bf16 %v3464_v51 }
 0x6a2   : > { %v2408_v58 = vsel %vm1522_vm15, %v2101_v12, %v3466_v54  ;;  %v2407_v37 = vsel %vm1522_vm15, %v2055_v8, %v3465_v55 }
 0x6a7   : > { %v3469_v52 = vpop.permute.xlu1 %3468 }
 0x6a8   : > { %v3471_v56 = vunpack.i.h.bf16 %v3469_v52  ;;  %v3470_v35 = vunpack.i.l.bf16 %v3469_v52 }
 0x6aa   : > { %v2411_v60 = vsel %vm2409_vm2, %v2408_v58, %v3471_v56  ;;  %v2410_v61 = vsel %vm2409_vm2, %v2407_v37, %v3470_v35  ;;  %v3509_v37 = vld [vmem:[%s3852_s30 + $0x10] sm:$0xff]  }
 0x6af   : > { %v3474_v44 = vpop.permute.xlu1 %3473 }
 0x6b0   : > { %v3476_v59 = vunpack.i.h.bf16 %v3474_v44  ;;  %v3475_v49 = vunpack.i.l.bf16 %v3474_v44 }
 0x6b2   : > { %v2414_v62 = vsel %vm2412_vm3, %v2411_v60, %v3476_v59  ;;  %v2413_v53 = vsel %vm2412_vm3, %v2410_v61, %v3475_v49  ;;  %v3510_v59 = vld [vmem:[%s3852_s30 + $0x18] sm:$0xff]   ;;  %v2540_v49 = vsub.s32 3, %v4171_v57 }
 0x6b3   : > { %v2415_v38 = vpack.c.bf16 %v2414_v62, %v2413_v53 }
 0x6b4   : > { %v2541_v60 = vrot.slane %v4175_v41, %v2540_v49 }
 0x6b5   : > { %3358 = vmatmul.mubr.msk.bf16.vlgmr.msra.gmra.mrb[52].mxu0 %vm838_vm14, %v2415_v38 }
 0x6b6   : > { %3377 = vmatprep.mubr.msk.bf16.mxu0 %vm3668_vm13, %v3667_v63  ;;  %3370 = vmatpush3.bf16.msra.mxu0 %v3507_v31 }
 0x6b7   : > { %3371 = vmatprep.subr.bf16.mxu0 %v3667_v63 }
 0x6ba   : > { %3372 = vmatpush3.bf16.msra.mxu0 %v3508_v32 }
 0x6bb   : > { %3373 = vmatprep.subr.bf16.mxu0 %v3667_v63 }
 0x6be   : > { %3374 = vmatpush3.bf16.msra.mxu0 %v3509_v37 }
 0x6bf   : > { %3375 = vmatprep.subr.bf16.mxu0 %v3667_v63 }
 0x6c2   : > { %3376 = vmatpush3.bf16.msra.mxu0 %v3510_v59 }
 0x788   : > { %v2473_v5 = vpop.f32.mrb[52].mxu0 }
 0x789   : > { %v2474_v6 = vadd.f32 %v2473_v5, %v2423_v4  ;;  %v3359_v7 = vpop.f32.mrb[53].mxu0 }
 0x78a   : > { %v2476_v8 = vpop.f32.mrb[54].mxu0  ;;  %v2611_v7 = vsub.s32 4, %v4171_v57 }
 0x78b   : > { %v2477_v9 = vadd.f32 %v2476_v8, %v2423_v4  ;;  %v3360_v11 = vpop.f32.mrb[55].mxu0  ;;  %v2480_v12 = vadd.f32 %v3551_v10, %v2474_v6 }
 0x78d   : > { %v2482_v13 = vsel %vm838_vm14, %v2480_v12, 0.0  ;;  %v2481_v15 = vadd.f32 %v3552_v14, %v2477_v9 }
 0x78e   : > { %2483 = vadd.xlane.f32.xlu1 %v2482_v13 }
 0x78f   : > { %v2485_v16 = vsel %vm838_vm14, %v2481_v15, 0.0 }
 0x790   : > { %2486 = vadd.xlane.f32.xlu0 %v2485_v16 }
 0x79f   : > { %2523 = vperm.xlu1 %3477, %v3814_v0   ;;  %v3505_v0 = vld [vmem:[%s3847_s27] sm:$0xff]   ;;  %s3070_s27 = sshll.u32 %s3653_s28, 9  ;;  %s3673_s28 = smov [#allocation5]  }
 0x7a0   : > { %3362 = vmatpush3.bf16.msra.mxu1 %v3505_v0  ;;  %s4217_s16 = scalar_lea.hbm %s4350_s5, %s3070_s27  ;;  %s3557_s21 = sshll.u32 %s3673_s28, 4  ;;  %s3558_s21 = int_to_ptr.vmem [resolvable:$false] %s3557_s21 }
 0x7a1   : > { %3363 = vmatprep.subr.bf16.mxu1 %v3667_v63  ;;  %v2612_v63 = vrot.slane %v4175_v41, %v2611_v7  ;;  %s3559_s12 = scalar_lea.vmem %s3558_s21, 1024  ;;  %p3560_p3 = scmp.lt.s32.totalorder %s4220_s6, %s3558_s21 }
 0x7a2   : > { %p3561_p5 = scmp.lt.s32.totalorder %s3559_s12, %s3553_s20 }
 0x7a4   : > { %3364 = vmatpush3.bf16.msra.mxu1 %v3506_v30  ;;  %p3562_p6 = por %p3561_p5, %p3560_p3 }
 0x7a6   : > { %p3563_p7 = pnand %p3562_p6, %p3556_p1 }
 0x81b   : > { %v2484_v18 = vpop.xlane.xlu1 %2483 }
 0x81c   : > { %v2489_v19 = vmul.f32 0.03125, %v2484_v18 }
 0x81d   : > { %v2487_v20 = vpop.xlane.xlu0 %2486 }
 0x81e   : > { %v2491_v22 = vsub.f32 %v2480_v12, %v2489_v19  ;;  %v2490_v23 = vmul.f32 0.03125, %v2487_v20 }
 0x81f   : > { %v4195_v54 = vpop.permute.xlu1 %2523 }
 0x820   : > { %v2492_v24 = vsub.f32 %v2481_v15, %v2490_v23  ;;  %v2493_v26 = vmul.f32 %v2491_v22, %v2491_v22 }
 0x822   : > { %v2495_v27 = vsel %vm838_vm14, %v2493_v26, 0.0  ;;  %v2494_v28 = vmul.f32 %v2492_v24, %v2492_v24 }
 0x823   : > { %2496 = vadd.xlane.f32.xlu0 %v2495_v27 }
 0x824   : > { %v2498_v29 = vsel %vm838_vm14, %v2494_v28, 0.0 }
 0x827   : > { %2499 = vadd.xlane.f32.xlu0 %v2498_v29 }
 0x83d   : > { %2528 = vperm.xlu0 %3478, %v3819_v1  }
 0x8b0   : > { %v2497_v33 = vpop.xlane.xlu0 %2496 }
 0x8b1   : > { %v2501_v34 = vmul.f32 0.03125, %v2497_v33 }
 0x8b3   : > { %v2503_v36 = vadd.f32 1e-05, %v2501_v34 }
 0x8b4   : > { %v2500_v39 = vpop.xlane.xlu0 %2499 }
 0x8b5   : > { %3543 = vrsqrt.f32 %v2503_v36  ;;  %v2502_v1 = vmul.f32 0.03125, %v2500_v39 }
 0x8b7   : > { %v2504_v40 = vadd.f32 1e-05, %v2502_v1 }
 0x8b9   : > { %3545 = vrsqrt.f32 %v2504_v40 }
 0x8bc   : > { %v4197_v55 = vpop.permute.xlu0 %2528 }
 0x8bf   : > { %v3544_v25 = vpop.eup %3543 }
 0x8c0   : > { %v2507_v45 = vmul.f32 %v3544_v25, %v2491_v22 }
 0x8c2   : > { %v2513_v47 = vmul.f32 %v2512_v42, %v2507_v45 }
 0x8c3   : > { %v3546_v48 = vpop.eup %3545 }
 0x8c4   : > { %v2508_v50 = vmul.f32 %v3546_v48, %v2492_v24  ;;  %v2519_v51 = vadd.f32 %v2518_v46, %v2513_v47 }
 0x8c6   : > { %v2514_v52 = vmul.f32 %v2512_v42, %v2508_v50  ;;  %v2531_v35 = vmul.f32 %v4195_v54, %v2519_v51 }
 0x8c8   : > { %v2520_v56 = vadd.f32 %v2518_v46, %v2514_v52 }
 0x8ca   : > { %v2532_v44 = vmul.f32 %v4197_v55, %v2520_v56 }
 0x8cc   : > { %v2533_v58 = vpack.c.bf16 %v2532_v44, %v2531_v35 }
 0x8ce   : > { %3366 = vmatmul.mubr.msk.bf16.vlgmr.msra.gmra.mrb[60].mxu1 %vm838_vm14, %v2533_v58 }
 0x9a1   : > { %v2591_v61 = vpop.f32.mrb[60].mxu1 }
 0x9a2   : > { %v2592_v62 = vadd.f32 %v2591_v61, %v2541_v60  ;;  %v3367_v53 = vpop.f32.mrb[61].mxu1 }
 0x9a3   : > { %v2594_v38 = vpop.f32.mrb[62].mxu1 }
 0x9a4   : > { %v2595_v2 = vadd.f32 %v2594_v38, %v2541_v60  ;;  %v3368_v3 = vpop.f32.mrb[63].mxu1  ;;  %v2598_v4 = vmax.f32 %v2592_v62, 0.0 }
 0x9a6   : > { %v2599_v5 = vmax.f32 %v2595_v2, 0.0 }
 0x9a8   : > { %v2600_v6 = vpack.c.bf16 %v2599_v5, %v2598_v4 }
 0x9aa   : > { %3378 = vmatmul.mubr.msk.bf16.vlgmr.msra.gmra.mrb[56].mxu0 %vm2637_vm4, %v2600_v6 }
 0xa7d   : > { %v2675_v8 = vpop.f32.mrb[56].mxu0 }
 0xa7e   : > { %v2676_v9 = vadd.f32 %v2675_v8, %v2612_v63  ;;  %v3379_v11 = vpop.f32.mrb[57].mxu0 }
 0xa7f   : > { %v2678_v10 = vpop.f32.mrb[58].mxu0 }
 0xa80   : > { %v2679_v12 = vadd.f32 %v2678_v10, %v2612_v63  ;;  %v3380_v13 = vpop.f32.mrb[59].mxu0  ;;  %v2682_v14 = vadd.f32 %v2676_v9, %v2531_v35 }
 0xa82   : > { %v2684_v15 = vsel %vm838_vm14, %v2682_v14, 0.0  ;;  %v2683_v16 = vadd.f32 %v2679_v12, %v2532_v44 }
 0xa83   : > { %2685 = vadd.xlane.f32.xlu1 %v2684_v15 }
 0xa84   : > { %v2687_v17 = vsel %vm838_vm14, %v2683_v16, 0.0 }
 0xa85   : > { %2688 = vadd.xlane.f32.xlu0 %v2687_v17 }
 0xb10   : > { %v2686_v18 = vpop.xlane.xlu1 %2685 }
 0xb11   : > { %v2690_v19 = vmul.f32 0.03125, %v2686_v18 }
 0xb12   : > { %v2689_v20 = vpop.xlane.xlu0 %2688 }
 0xb13   : > { %v2692_v22 = vsub.f32 %v2682_v14, %v2690_v19  ;;  %v2691_v23 = vmul.f32 0.03125, %v2689_v20 }
 0xb15   : > { %v2693_v24 = vsub.f32 %v2683_v16, %v2691_v23  ;;  %v2694_v26 = vmul.f32 %v2692_v22, %v2692_v22 }
 0xb17   : > { %v2696_v27 = vsel %vm838_vm14, %v2694_v26, 0.0  ;;  %v2695_v28 = vmul.f32 %v2693_v24, %v2693_v24 }
 0xb18   : > { %2697 = vadd.xlane.f32.xlu1 %v2696_v27 }
 0xb19   : > { %v2699_v29 = vsel %vm838_vm14, %v2695_v28, 0.0 }
 0xb1c   : > { %2700 = vadd.xlane.f32.xlu1 %v2699_v29 }
 0xb1d   : > { %3566 = shalt.err (!%p3563_p7)
}
 0xb1e   : > { %s3567_s23 = scalar_lea.hbm %s4217_s16, 512  ;;  %s3571_s13 = scalar_lea.hbm %s4350_s5, 1024 }
 0xb1f   : > { %p3568_p9 = scmp.ne.s32.totalorder %s4217_s16, %s3567_s23  ;;  %p3572_p12 = scmp.lt.u32.totalorder %s4217_s16, %s4350_s5 }
 0xb20   : > { %p3573_p13 = scmp.lt.u32.totalorder %s3571_s13, %s3567_s23  ;;  %p3575_p1 = scmp.lt.u32.totalorder %s3567_s23, %s4217_s16 }
 0xb21   : > { %p3569_p10 = pnand %p3568_p9, %p3794_p4 }
 0xb22   : > { %p3574_p0 = por %p3573_p13, %p3572_p12 }
 0xb23   : > { %p3570_p11 = pneg %p3569_p10 }
 0xb24   : > { %p3576_p3 = por %p3575_p1, %p3574_p0 }
 0xb26   : > { %p3577_p5 = pnand %p3576_p3, %p3570_p11 }
 0xb28   : > { %3580 = shalt.err (!%p3577_p5)
}
 0xb29   : > { %s3674_s15 = smov 64   ;;  %s3675_s27 = smov 4   ;;  %v2712_v36 = vsub.s32 5, %v4171_v57  ;;  %v2718_v39 = vsub.s32 6, %v4171_v57 }
 0xb2a   : > { %3383 = dma.vmem_to_hbm [thread:$0]  (%p3794_p4), %s4220_s6, 512, %s4217_s16, %s4224_s17, %s3674_s15, %s3674_s15, %s3675_s27  }
 0xb2b   : > { %v2713_v1 = vrot.slane %v4175_v41, %v2712_v36  ;;  %v2719_v42 = vrot.slane %v4175_v41, %v2718_v39  ;;  %s3676_s30 = smov [#allocation3]  }
 0xb2c   : > { %s2740_s14 = sshll.u32 %s3676_s30, 4  ;;  %s2741_s14 = int_to_ptr.vmem [resolvable:$true] %s2740_s14 }
 0xb2d   : > { %s3581_s16 = scalar_lea.vmem %s2741_s14, 256  ;;  %p3588_p9 = scmp.lt.s32.totalorder %s2741_s14, %s2741_s14 }
 0xb2e   : > { %p3582_p4 = scmp.ne.s32.totalorder %s2741_s14, %s3581_s16  ;;  %p3589_p10 = scmp.lt.s32.totalorder %s3581_s16, %s3581_s16 }
 0xb30   : > { %p3583_p6 = pnand %p3582_p4, %p3784_p2  ;;  %p3590_p11 = por %p3589_p10, %p3588_p9 }
 0xb32   : > { %p3584_p7 = pneg %p3583_p6 }
 0xb34   : > { %p3591_p12 = pnand %p3590_p11, %p3584_p7 }
 0xba5   : > { %v2698_v0 = vpop.xlane.xlu1 %2697 }
 0xba6   : > { %v2702_v30 = vmul.f32 0.03125, %v2698_v0 }
 0xba8   : > { %v2704_v31 = vadd.f32 1e-05, %v2702_v30 }
 0xba9   : > { %v2701_v32 = vpop.xlane.xlu1 %2700 }
 0xbaa   : > { %3547 = vrsqrt.f32 %v2704_v31  ;;  %v2703_v33 = vmul.f32 0.03125, %v2701_v32 }
 0xbac   : > { %v2705_v34 = vadd.f32 1e-05, %v2703_v33 }
 0xbae   : > { %3549 = vrsqrt.f32 %v2705_v34 }
 0xbb4   : > { %v3548_v40 = vpop.eup %3547 }
 0xbb5   : > { %v2708_v21 = vmul.f32 %v3548_v40, %v2692_v22 }
 0xbb7   : > { %v2714_v43 = vmul.f32 %v2713_v1, %v2708_v21 }
 0xbb8   : > { %v3550_v25 = vpop.eup %3549 }
 0xbb9   : > { %v2709_v45 = vmul.f32 %v3550_v25, %v2693_v24  ;;  %v2720_v46 = vadd.f32 %v2719_v42, %v2714_v43 }
 0xbbb   : > { %v2715_v47 = vmul.f32 %v2713_v1, %v2709_v45  ;;  %v2722_v48 = vmul.f32 %v2720_v46, %v4195_v54 }
 0xbbd   : > { %v2721_v50 = vadd.f32 %v2719_v42, %v2715_v47  ;;  %2724 = vst.msk [vmem:[#allocation3] sm:$0xff] %vm838_vm14, %v2722_v48 }
 0xbbf   : > { %v2723_v57 = vmul.f32 %v2721_v50, %v4197_v55 }
 0xbc1   : > { %2725 = vst.msk [vmem:[#allocation3 + $0x8] sm:$0xff] %vm838_vm14, %v2723_v57 }
 0xbc2   : > { %3594 = shalt.err (!%p3591_p12)
}
 0xbc3   : > { %s4353_s17 = sld [smem:[#allocation21_spill]] }
 0xbc9   : > { %s3595_s20 = scalar_lea.hbm %s4353_s17, 256 }
 0xbca   : > { %p3596_p13 = scmp.ne.s32.totalorder %s4353_s17, %s3595_s20  ;;  %p3601_p3 = scmp.lt.u32.totalorder %s3595_s20, %s4353_s17 }
 0xbcc   : > { %p3597_p0 = pnand %p3596_p13, %p3784_p2 }
 0xbce   : > { %p3598_p1 = pneg %p3597_p0 }
 0xbd0   : > { %p3603_p5 = pnand %p3601_p3, %p3598_p1 }
 0xbd2   : > { %3606 = shalt.err (!%p3603_p5)
}
 0xbd3   : > { %s3677_s18 = smov 128  }
 0xbd4   : > { %3382 = dma.vmem_to_hbm [thread:$0]  (%p3784_p2), %s2741_s14, 256, %s4353_s17, [#allocation4], %s3677_s18, %s3677_s18, %s3669_s25  }
 0xbd5   : > { %3632 = dma.done.wait (%p3784_p2), [#allocation4], 256  }
 0xbd6   : > { %3634 = vsyncadd (%p3784_p2), [#allocation4], 4294967040 }
 0xbd7 PF: > { %s4354_s19 = sld [smem:[#allocation12_spill]]  ;;  %s4355_s24 = sld [smem:[#allocation9_spill]] }
 0xbdd   : > { %p3393_p4 = scmp.ge.s32.totalorder %s4354_s19, 2  ;;  %s2778_s27 = sand.u32 1, %s4355_s24  }
 0xbde   : > { %s2779_s30 = scalar_lea.sflag [#allocation6], %s2778_s27 }
 0xbdf   : > { %p3388_p6 = pnand %p3393_p4, %p3801_p8 }
 0xbe1   : > { %3636 = dma.done.wait (!%p3388_p6), %s2779_s30, 512  }
 0xbe2   : > { %3638 = vsyncadd (!%p3388_p6), %s2779_s30, 4294966784  ;;  %s28_s30 = sadd.s32 1, %s4354_s19   ;;  %s4357_s14 = sld [smem:[#allocation10_spill]] }
 0xbe3   : > { %p25_p7 = scmp.ge.s32.totalorder %s28_s30, 4   ;;  %s4358_s27 = sld [smem:[#allocation17_spill]] }
 0xbe4   : > { %s4359_s28 = sld [smem:[#allocation11_spill]]  ;;  %s4360_s29 = sld [smem:[#allocation14_spill]] }
 0xbe5   : > { %s4361_s25 = smov %s3645_s26  ;;  %27 = sbr.rel (!%p25_p7) target bundleno = 11 (0xb), region = 144 }
 0xbe8   : > { %s4362_s26 = smov %s4357_s14 }
 0xbec   :  { %2784 = vsyncpa [#allocation4], 1 }
 0xbed   :  { %2786 = vsyncpa [#allocation4 + $0x1], 1 }
 0xbee   :  { %2787 = vsyncpa [#allocation6], 1 }
 0xbef   :  { %2789 = vsyncpa [#allocation6 + $0x1], 1 }

</bundles_post_ra>
